<compile_context>
chip_gen: v7x
topology: tpu7x:2x2x1
jax: 0.10.0
libtpu: 0.0.40
codegen_flags: <defaults>
</compile_context>

<pallas_src>
import jax
import jax.numpy as jnp
from jax.experimental import pallas as pl
from jax.experimental.pallas import tpu as pltpu

# ----- hyperparameters (small) -----
INPUT_DIM = 32
HIDDEN = 32
NUM_LAYERS = 1          # single layer -> dropout is a no-op
STATS_SIZE = 32
LAST_HIDDEN = 32
BIAS_INIT = 90.0        # set_target == 'bias'
B = 8                   # batch
T = 8                   # max sequence length


def _lstm_regr_kernel(x_ref, lens_ref, stats_ref,
                      wih_ref, whh_ref, b_ref,
                      wfc_ref, head_ref,
                      out_ref):
    # Layouts (all prepared in the wrapper):
    #   x_ref    : (T*B, I)      time-major, flattened; rows t*B:(t+1)*B == x[t]
    #   lens_ref : (B, 1) int32
    #   stats_ref: (B, S)
    #   wih_ref  : (I, 8H)       cols 0:4H = W_ih_fwd.T, cols 4H:8H = W_ih_bwd.T
    #   whh_ref  : (2H, 8H)      block-diagonal: rows 0:H -> cols 0:4H (fwd),
    #                            rows H:2H -> cols 4H:8H (bwd)
    #   b_ref    : (1, 8H)       (b_ih + b_hh) per direction, same column layout
    #   wfc_ref  : (2H+S, L)
    #   head_ref : (3, L)        row0 = b_fc, row1 = w_out row, row2 = b_out (bcast)
    # Gate order within each 4H block is PyTorch's (i, f, g, o).
    H = HIDDEN
    B_ = lens_ref.shape[0]
    T_ = x_ref.shape[0] // B_

    lens = lens_ref[...]                                   # (B, 1) int32
    whh = whh_ref[...]                                     # hoisted out of the loop

    # --- input projection for both directions, one MXU pass, bias folded in ---
    gx = (jnp.dot(x_ref[...], wih_ref[...], preferred_element_type=jnp.float32)
          + b_ref[...])                                    # (T*B, 8H)

    def gate_update(gates, c):
        # gates: (B, 4H) = one full vreg -> 2 EUP passes (sigmoid + tanh), then
        # static 32-lane slices for the individual gates (i, f, g, o).
        sg = jax.nn.sigmoid(gates)
        th = jnp.tanh(gates)
        i_g = sg[:, 0 * H:1 * H]
        f_g = sg[:, 1 * H:2 * H]
        g_g = th[:, 2 * H:3 * H]
        o_g = sg[:, 3 * H:4 * H]
        c_new = f_g * c + i_g * g_g
        h_new = o_g * jnp.tanh(c_new)
        return h_new, c_new

    zeros = jnp.zeros((B_, H), jnp.float32)
    h_f, c_f, h_b, c_b = zeros, zeros, zeros, zeros

    # --- fused fwd/bwd recurrence, fully unrolled (T is a static Python int) ---
    for k in range(T_):
        tf = k              # forward direction timestep
        tb = T_ - 1 - k     # backward direction timestep

        # one N=256 recurrent matmul for both directions (block-diagonal W_hh)
        h_cat = jnp.concatenate([h_f, h_b], axis=1)        # (B, 2H)
        hh = jnp.dot(h_cat, whh, preferred_element_type=jnp.float32)  # (B, 8H)

        gates_f = gx[tf * B_:(tf + 1) * B_, 0:4 * H] + hh[:, 0:4 * H]
        gates_b = gx[tb * B_:(tb + 1) * B_, 4 * H:8 * H] + hh[:, 4 * H:8 * H]

        hf_n, cf_n = gate_update(gates_f, c_f)
        hb_n, cb_n = gate_update(gates_b, c_b)

        # packed-sequence masking: only update while inside the real sequence.
        # Equivalent to pack_padded_sequence because masked steps pass the
        # (zero) initial state through unchanged.
        m_f = lens > tf                                    # (B, 1)
        m_b = lens > tb
        h_f = jnp.where(m_f, hf_n, h_f)
        c_f = jnp.where(m_f, cf_n, c_f)
        h_b = jnp.where(m_b, hb_n, h_b)
        c_b = jnp.where(m_b, cb_n, c_b)

    # --- head: hidden = cat(h_f, h_b, tanh(stats)); fc -> ReLU -> tanh -> out ---
    stats_t = jnp.tanh(stats_ref[...])                     # stablize == True
    wfc = wfc_ref[...]                                     # (2H+S, L)
    dense = (jnp.dot(h_f, wfc[0:H, :], preferred_element_type=jnp.float32)
             + jnp.dot(h_b, wfc[H:2 * H, :], preferred_element_type=jnp.float32)
             + jnp.dot(stats_t, wfc[2 * H:, :], preferred_element_type=jnp.float32)
             + head_ref[0:1, :])                           # + b_fc
    act = jnp.tanh(jnp.maximum(dense, 0.0))                # ReLU then tanh (stablize)

    # final (L -> 1) projection as VPU multiply + lane reduction (no N=1 matmul)
    out = (jnp.sum(act * head_ref[1:2, :], axis=-1, keepdims=True)
           + head_ref[2:3, 0:1])                           # + out bias (=90)
    out_ref[...] = out.astype(out_ref.dtype)


@jax.jit
def lstm_regr_forward(batch, seq_lengths, statistics, params):
    """batch: (B, T, I) batch-first (like the PyTorch module); returns (B, 1)."""
    H = HIDDEN
    x_flat = (jnp.transpose(batch, (1, 0, 2))              # (T, B, I)
              .astype(jnp.float32)
              .reshape(T * batch.shape[0], INPUT_DIM))     # (T*B, I)
    lens = seq_lengths.astype(jnp.int32).reshape(-1, 1)    # (B, 1)

    # concatenated input-projection weights: cols 0:4H fwd, 4H:8H bwd
    wih_cat = jnp.concatenate([params["w_ih_f"].T, params["w_ih_b"].T], axis=1)
    # block-diagonal recurrent weights: one N=256 MXU pass serves both directions
    whh_bd = jnp.zeros((2 * H, 8 * H), jnp.float32)
    whh_bd = whh_bd.at[0:H, 0:4 * H].set(params["w_hh_f"].T)
    whh_bd = whh_bd.at[H:2 * H, 4 * H:8 * H].set(params["w_hh_b"].T)
    # combined biases, same column layout
    b_cat = jnp.concatenate([(params["b_ih_f"] + params["b_hh_f"]),
                             (params["b_ih_b"] + params["b_hh_b"])]).reshape(1, -1)
    wfc = params["w_fc"].T                                  # (2H+S, L)
    # packed head tensors: row0 = b_fc, row1 = w_out row, row2 = b_out broadcast
    head = jnp.stack([params["b_fc"],
                      params["w_out"][0],
                      jnp.broadcast_to(params["b_out"], (LAST_HIDDEN,))], axis=0)

    n_in = 8
    return pl.pallas_call(
        _lstm_regr_kernel,
        out_shape=jax.ShapeDtypeStruct((batch.shape[0], 1), jnp.float32),
        in_specs=[pl.BlockSpec(memory_space=pltpu.MemorySpace.VMEM)] * n_in,
        out_specs=pl.BlockSpec(memory_space=pltpu.MemorySpace.VMEM),
        cost_estimate=pl.CostEstimate(flops=3_400_000,
                                      transcendentals=40_000,
                                      bytes_accessed=110_000),
    )(x_flat, lens, statistics.astype(jnp.float32),
      wih_cat, whh_bd, b_cat, wfc, head)


def init_params(key):
    """Deterministic init mirroring PyTorch defaults + init_weights(bias_init=90)."""
    ks = jax.random.split(key, 11)
    u = lambda k, shape, bound: jax.random.uniform(k, shape, jnp.float32, -bound, bound)
    kh = 1.0 / (HIDDEN ** 0.5)
    p = {
        "w_ih_f": u(ks[0], (4 * HIDDEN, INPUT_DIM), kh),
        "w_hh_f": u(ks[1], (4 * HIDDEN, HIDDEN), kh),
        "b_ih_f": u(ks[2], (4 * HIDDEN,), kh),
        "b_hh_f": u(ks[3], (4 * HIDDEN,), kh),
        "w_ih_b": u(ks[4], (4 * HIDDEN, INPUT_DIM), kh),
        "w_hh_b": u(ks[5], (4 * HIDDEN, HIDDEN), kh),
        "b_ih_b": u(ks[6], (4 * HIDDEN,), kh),
        "b_hh_b": u(ks[7], (4 * HIDDEN,), kh),
    }
    fan_fc = 2 * HIDDEN + STATS_SIZE
    kfc = 1.0 / (fan_fc ** 0.5)
    p["w_fc"] = u(ks[8], (LAST_HIDDEN, fan_fc), kfc)
    p["b_fc"] = u(ks[9], (LAST_HIDDEN,), kfc)
    ko = 1.0 / (LAST_HIDDEN ** 0.5)
    p["w_out"] = u(ks[10], (1, LAST_HIDDEN), ko)
    p["b_out"] = jnp.full((1,), BIAS_INIT, jnp.float32)    # self.out.bias.data.fill_(90)
    return p


def reference_forward(batch, seq_lengths, statistics, params):
    """Pure-JAX reference with identical packed-sequence semantics."""
    x = jnp.transpose(batch, (1, 0, 2)).astype(jnp.float32)       # (T, B, I)
    lens = seq_lengths.astype(jnp.int32).reshape(-1, 1)
    H = HIDDEN

    def cell(x_t, h, c, w_ih, w_hh, b):
        g = x_t @ w_ih.T + h @ w_hh.T + b
        i = jax.nn.sigmoid(g[:, :H]); f = jax.nn.sigmoid(g[:, H:2 * H])
        gg = jnp.tanh(g[:, 2 * H:3 * H]); o = jax.nn.sigmoid(g[:, 3 * H:])
        c_new = f * c + i * gg
        return o * jnp.tanh(c_new), c_new

    def run(direction):
        h = jnp.zeros((batch.shape[0], H)); c = jnp.zeros_like(h)
        ts = range(T) if direction == "fwd" else range(T - 1, -1, -1)
        w_ih = params["w_ih_f" if direction == "fwd" else "w_ih_b"]
        w_hh = params["w_hh_f" if direction == "fwd" else "w_hh_b"]
        b = (params["b_ih_f"] + params["b_hh_f"]) if direction == "fwd" \
            else (params["b_ih_b"] + params["b_hh_b"])
        for t in ts:
            h_new, c_new = cell(x[t], h, c, w_ih, w_hh, b)
            m = lens > t
            h = jnp.where(m, h_new, h); c = jnp.where(m, c_new, c)
        return h

    hidden = jnp.concatenate([run("fwd"), run("bwd"),
                              jnp.tanh(statistics.astype(jnp.float32))], axis=1)
    dense = hidden @ params["w_fc"].T + params["b_fc"]
    act = jnp.tanh(jnp.maximum(dense, 0.0))
    return act @ params["w_out"].T + params["b_out"]


if __name__ == "__main__":
    key = jax.random.PRNGKey(0)
    k_x, k_s, k_l, k_p = jax.random.split(key, 4)

    batch = jax.random.normal(k_x, (B, T, INPUT_DIM), jnp.float32)
    statistics = jax.random.normal(k_s, (B, STATS_SIZE), jnp.float32)
    seq_lengths = jax.random.randint(k_l, (B,), 1, T + 1, jnp.int32)
    # zero the padding beyond each sequence's length (as packed sequences imply;
    # not strictly required by the kernel since masked steps ignore x anyway)
    t_idx = jnp.arange(T)[None, :, None]
    batch = jnp.where(t_idx < seq_lengths[:, None, None], batch, 0.0)

    params = init_params(k_p)

    out = lstm_regr_forward(batch, seq_lengths, statistics, params)
    out = jax.block_until_ready(out)

    ref = reference_forward(batch, seq_lengths, statistics, params)
    assert out.shape == (B, 1)
    assert jnp.allclose(out, ref, rtol=1e-3, atol=1e-3), (out, ref)
    print("KERNEL_OK")
</pallas_src>

<mosaic_0001>
module attributes {stable_mosaic.version = 11 : i64} {
  func.func @_lstm_regr_kernel(%arg0: memref<64x32xf32, #tpu.memory_space<vmem>>, %arg1: memref<8x1xi32, #tpu.memory_space<vmem>>, %arg2: memref<8x32xf32, #tpu.memory_space<vmem>>, %arg3: memref<32x256xf32, #tpu.memory_space<vmem>>, %arg4: memref<64x256xf32, #tpu.memory_space<vmem>>, %arg5: memref<1x256xf32, #tpu.memory_space<vmem>>, %arg6: memref<96x32xf32, #tpu.memory_space<vmem>>, %arg7: memref<3x32xf32, #tpu.memory_space<vmem>>, %arg8: memref<8x1xf32, #tpu.memory_space<vmem>>) attributes {dimension_semantics = [], scalar_prefetch = 0 : i64, scratch_operands = 0 : i64, tpu.core_type = #tpu.core_type<tc>} {
    %c0 = arith.constant 0 : index
    %c0_0 = arith.constant 0 : index
    %0 = vector.load %arg1[%c0, %c0_0] : memref<8x1xi32, #tpu.memory_space<vmem>>, vector<8x1xi32>
    %c0_1 = arith.constant 0 : index
    %c0_2 = arith.constant 0 : index
    %1 = vector.load %arg4[%c0_1, %c0_2] : memref<64x256xf32, #tpu.memory_space<vmem>>, vector<64x256xf32>
    %c0_3 = arith.constant 0 : index
    %c0_4 = arith.constant 0 : index
    %2 = vector.load %arg0[%c0_3, %c0_4] : memref<64x32xf32, #tpu.memory_space<vmem>>, vector<64x32xf32>
    %c0_5 = arith.constant 0 : index
    %c0_6 = arith.constant 0 : index
    %3 = vector.load %arg3[%c0_5, %c0_6] : memref<32x256xf32, #tpu.memory_space<vmem>>, vector<32x256xf32>
    %cst = arith.constant dense<0.000000e+00> : vector<64x256xf32>
    %4 = tpu.matmul %2, %3, %cst {dimension_numbers = #tpu.dot_dimension_numbers<[1], [0], [0], [1], [0, 0, 1, 1], [], []>} : vector<64x32xf32>, vector<32x256xf32>, vector<64x256xf32> -> vector<64x256xf32>
    %c0_7 = arith.constant 0 : index
    %c0_8 = arith.constant 0 : index
    %5 = vector.load %arg5[%c0_7, %c0_8] : memref<1x256xf32, #tpu.memory_space<vmem>>, vector<1x256xf32>
    %6 = vector.broadcast %5 : vector<1x256xf32> to vector<64x256xf32>
    %7 = arith.addf %4, %6 : vector<64x256xf32>
    %cst_9 = arith.constant 0.000000e+00 : f32
    %8 = vector.broadcast %cst_9 : f32 to vector<8x32xf32>
    %9 = tpu.concatenate %8, %8 in 1 : vector<8x32xf32>, vector<8x32xf32> -> vector<8x64xf32>
    %cst_10 = arith.constant dense<0.000000e+00> : vector<8x256xf32>
    %10 = tpu.matmul %9, %1, %cst_10 {dimension_numbers = #tpu.dot_dimension_numbers<[1], [0], [0], [1], [0, 0, 1, 1], [], []>} : vector<8x64xf32>, vector<64x256xf32>, vector<8x256xf32> -> vector<8x256xf32>
    %11 = vector.extract_strided_slice %7 {offsets = [0, 0], sizes = [8, 128], strides = [1, 1]} : vector<64x256xf32> to vector<8x128xf32>
    %12 = vector.extract_strided_slice %10 {offsets = [0, 0], sizes = [8, 128], strides = [1, 1]} : vector<8x256xf32> to vector<8x128xf32>
    %13 = arith.addf %11, %12 : vector<8x128xf32>
    %14 = vector.extract_strided_slice %7 {offsets = [56, 128], sizes = [8, 128], strides = [1, 1]} : vector<64x256xf32> to vector<8x128xf32>
    %15 = vector.extract_strided_slice %10 {offsets = [0, 128], sizes = [8, 128], strides = [1, 1]} : vector<8x256xf32> to vector<8x128xf32>
    %16 = arith.addf %14, %15 : vector<8x128xf32>
    %17 = arith.negf %13 : vector<8x128xf32>
    %18 = math.exp %17 : vector<8x128xf32>
    %cst_11 = arith.constant 1.000000e+00 : f32
    %19 = vector.broadcast %cst_11 : f32 to vector<8x128xf32>
    %20 = arith.addf %19, %18 : vector<8x128xf32>
    %21 = arith.divf %19, %20 : vector<8x128xf32>
    %22 = math.tanh %13 : vector<8x128xf32>
    %23 = vector.extract_strided_slice %21 {offsets = [0, 0], sizes = [8, 32], strides = [1, 1]} : vector<8x128xf32> to vector<8x32xf32>
    %24 = vector.extract_strided_slice %21 {offsets = [0, 32], sizes = [8, 32], strides = [1, 1]} : vector<8x128xf32> to vector<8x32xf32>
    %25 = vector.extract_strided_slice %22 {offsets = [0, 64], sizes = [8, 32], strides = [1, 1]} : vector<8x128xf32> to vector<8x32xf32>
    %26 = vector.extract_strided_slice %21 {offsets = [0, 96], sizes = [8, 32], strides = [1, 1]} : vector<8x128xf32> to vector<8x32xf32>
    %27 = arith.mulf %24, %8 : vector<8x32xf32>
    %28 = arith.mulf %23, %25 : vector<8x32xf32>
    %29 = arith.addf %27, %28 : vector<8x32xf32>
    %30 = math.tanh %29 : vector<8x32xf32>
    %31 = arith.mulf %26, %30 : vector<8x32xf32>
    %32 = arith.negf %16 : vector<8x128xf32>
    %33 = math.exp %32 : vector<8x128xf32>
    %cst_12 = arith.constant 1.000000e+00 : f32
    %34 = vector.broadcast %cst_12 : f32 to vector<8x128xf32>
    %35 = arith.addf %34, %33 : vector<8x128xf32>
    %36 = arith.divf %34, %35 : vector<8x128xf32>
    %37 = math.tanh %16 : vector<8x128xf32>
    %38 = vector.extract_strided_slice %36 {offsets = [0, 0], sizes = [8, 32], strides = [1, 1]} : vector<8x128xf32> to vector<8x32xf32>
    %39 = vector.extract_strided_slice %36 {offsets = [0, 32], sizes = [8, 32], strides = [1, 1]} : vector<8x128xf32> to vector<8x32xf32>
    %40 = vector.extract_strided_slice %37 {offsets = [0, 64], sizes = [8, 32], strides = [1, 1]} : vector<8x128xf32> to vector<8x32xf32>
    %41 = vector.extract_strided_slice %36 {offsets = [0, 96], sizes = [8, 32], strides = [1, 1]} : vector<8x128xf32> to vector<8x32xf32>
    %42 = arith.mulf %39, %8 : vector<8x32xf32>
    %43 = arith.mulf %38, %40 : vector<8x32xf32>
    %44 = arith.addf %42, %43 : vector<8x32xf32>
    %45 = math.tanh %44 : vector<8x32xf32>
    %46 = arith.mulf %41, %45 : vector<8x32xf32>
    %c0_i32 = arith.constant 0 : i32
    %47 = vector.broadcast %c0_i32 : i32 to vector<8x1xi32>
    %48 = arith.cmpi sgt, %0, %47 : vector<8x1xi32>
    %c7_i32 = arith.constant 7 : i32
    %49 = vector.broadcast %c7_i32 : i32 to vector<8x1xi32>
    %50 = arith.cmpi sgt, %0, %49 : vector<8x1xi32>
    %51 = vector.shape_cast %48 : vector<8x1xi1> to vector<8x1xi1>
    %52 = vector.broadcast %51 : vector<8x1xi1> to vector<8x32xi1>
    %53 = arith.select %52, %31, %8 : vector<8x32xi1>, vector<8x32xf32>
    %54 = vector.shape_cast %48 : vector<8x1xi1> to vector<8x1xi1>
    %55 = vector.broadcast %54 : vector<8x1xi1> to vector<8x32xi1>
    %56 = arith.select %55, %29, %8 : vector<8x32xi1>, vector<8x32xf32>
    %57 = vector.shape_cast %50 : vector<8x1xi1> to vector<8x1xi1>
    %58 = vector.broadcast %57 : vector<8x1xi1> to vector<8x32xi1>
    %59 = arith.select %58, %46, %8 : vector<8x32xi1>, vector<8x32xf32>
    %60 = vector.shape_cast %50 : vector<8x1xi1> to vector<8x1xi1>
    %61 = vector.broadcast %60 : vector<8x1xi1> to vector<8x32xi1>
    %62 = arith.select %61, %44, %8 : vector<8x32xi1>, vector<8x32xf32>
    %63 = tpu.concatenate %53, %59 in 1 : vector<8x32xf32>, vector<8x32xf32> -> vector<8x64xf32>
    %cst_13 = arith.constant dense<0.000000e+00> : vector<8x256xf32>
    %64 = tpu.matmul %63, %1, %cst_13 {dimension_numbers = #tpu.dot_dimension_numbers<[1], [0], [0], [1], [0, 0, 1, 1], [], []>} : vector<8x64xf32>, vector<64x256xf32>, vector<8x256xf32> -> vector<8x256xf32>
    %65 = vector.extract_strided_slice %7 {offsets = [8, 0], sizes = [8, 128], strides = [1, 1]} : vector<64x256xf32> to vector<8x128xf32>
    %66 = vector.extract_strided_slice %64 {offsets = [0, 0], sizes = [8, 128], strides = [1, 1]} : vector<8x256xf32> to vector<8x128xf32>
    %67 = arith.addf %65, %66 : vector<8x128xf32>
    %68 = vector.extract_strided_slice %7 {offsets = [48, 128], sizes = [8, 128], strides = [1, 1]} : vector<64x256xf32> to vector<8x128xf32>
    %69 = vector.extract_strided_slice %64 {offsets = [0, 128], sizes = [8, 128], strides = [1, 1]} : vector<8x256xf32> to vector<8x128xf32>
    %70 = arith.addf %68, %69 : vector<8x128xf32>
    %71 = arith.negf %67 : vector<8x128xf32>
    %72 = math.exp %71 : vector<8x128xf32>
    %cst_14 = arith.constant 1.000000e+00 : f32
    %73 = vector.broadcast %cst_14 : f32 to vector<8x128xf32>
    %74 = arith.addf %73, %72 : vector<8x128xf32>
    %75 = arith.divf %73, %74 : vector<8x128xf32>
    %76 = math.tanh %67 : vector<8x128xf32>
    %77 = vector.extract_strided_slice %75 {offsets = [0, 0], sizes = [8, 32], strides = [1, 1]} : vector<8x128xf32> to vector<8x32xf32>
    %78 = vector.extract_strided_slice %75 {offsets = [0, 32], sizes = [8, 32], strides = [1, 1]} : vector<8x128xf32> to vector<8x32xf32>
    %79 = vector.extract_strided_slice %76 {offsets = [0, 64], sizes = [8, 32], strides = [1, 1]} : vector<8x128xf32> to vector<8x32xf32>
    %80 = vector.extract_strided_slice %75 {offsets = [0, 96], sizes = [8, 32], strides = [1, 1]} : vector<8x128xf32> to vector<8x32xf32>
    %81 = arith.mulf %78, %56 : vector<8x32xf32>
    %82 = arith.mulf %77, %79 : vector<8x32xf32>
    %83 = arith.addf %81, %82 : vector<8x32xf32>
    %84 = math.tanh %83 : vector<8x32xf32>
    %85 = arith.mulf %80, %84 : vector<8x32xf32>
    %86 = arith.negf %70 : vector<8x128xf32>
    %87 = math.exp %86 : vector<8x128xf32>
    %cst_15 = arith.constant 1.000000e+00 : f32
    %88 = vector.broadcast %cst_15 : f32 to vector<8x128xf32>
    %89 = arith.addf %88, %87 : vector<8x128xf32>
    %90 = arith.divf %88, %89 : vector<8x128xf32>
    %91 = math.tanh %70 : vector<8x128xf32>
    %92 = vector.extract_strided_slice %90 {offsets = [0, 0], sizes = [8, 32], strides = [1, 1]} : vector<8x128xf32> to vector<8x32xf32>
    %93 = vector.extract_strided_slice %90 {offsets = [0, 32], sizes = [8, 32], strides = [1, 1]} : vector<8x128xf32> to vector<8x32xf32>
    %94 = vector.extract_strided_slice %91 {offsets = [0, 64], sizes = [8, 32], strides = [1, 1]} : vector<8x128xf32> to vector<8x32xf32>
    %95 = vector.extract_strided_slice %90 {offsets = [0, 96], sizes = [8, 32], strides = [1, 1]} : vector<8x128xf32> to vector<8x32xf32>
    %96 = arith.mulf %93, %62 : vector<8x32xf32>
    %97 = arith.mulf %92, %94 : vector<8x32xf32>
    %98 = arith.addf %96, %97 : vector<8x32xf32>
    %99 = math.tanh %98 : vector<8x32xf32>
    %100 = arith.mulf %95, %99 : vector<8x32xf32>
    %c1_i32 = arith.constant 1 : i32
    %101 = vector.broadcast %c1_i32 : i32 to vector<8x1xi32>
    %102 = arith.cmpi sgt, %0, %101 : vector<8x1xi32>
    %c6_i32 = arith.constant 6 : i32
    %103 = vector.broadcast %c6_i32 : i32 to vector<8x1xi32>
    %104 = arith.cmpi sgt, %0, %103 : vector<8x1xi32>
    %105 = vector.shape_cast %102 : vector<8x1xi1> to vector<8x1xi1>
    %106 = vector.broadcast %105 : vector<8x1xi1> to vector<8x32xi1>
    %107 = arith.select %106, %85, %53 : vector<8x32xi1>, vector<8x32xf32>
    %108 = vector.shape_cast %102 : vector<8x1xi1> to vector<8x1xi1>
    %109 = vector.broadcast %108 : vector<8x1xi1> to vector<8x32xi1>
    %110 = arith.select %109, %83, %56 : vector<8x32xi1>, vector<8x32xf32>
    %111 = vector.shape_cast %104 : vector<8x1xi1> to vector<8x1xi1>
    %112 = vector.broadcast %111 : vector<8x1xi1> to vector<8x32xi1>
    %113 = arith.select %112, %100, %59 : vector<8x32xi1>, vector<8x32xf32>
    %114 = vector.shape_cast %104 : vector<8x1xi1> to vector<8x1xi1>
    %115 = vector.broadcast %114 : vector<8x1xi1> to vector<8x32xi1>
    %116 = arith.select %115, %98, %62 : vector<8x32xi1>, vector<8x32xf32>
    %117 = tpu.concatenate %107, %113 in 1 : vector<8x32xf32>, vector<8x32xf32> -> vector<8x64xf32>
    %cst_16 = arith.constant dense<0.000000e+00> : vector<8x256xf32>
    %118 = tpu.matmul %117, %1, %cst_16 {dimension_numbers = #tpu.dot_dimension_numbers<[1], [0], [0], [1], [0, 0, 1, 1], [], []>} : vector<8x64xf32>, vector<64x256xf32>, vector<8x256xf32> -> vector<8x256xf32>
    %119 = vector.extract_strided_slice %7 {offsets = [16, 0], sizes = [8, 128], strides = [1, 1]} : vector<64x256xf32> to vector<8x128xf32>
    %120 = vector.extract_strided_slice %118 {offsets = [0, 0], sizes = [8, 128], strides = [1, 1]} : vector<8x256xf32> to vector<8x128xf32>
    %121 = arith.addf %119, %120 : vector<8x128xf32>
    %122 = vector.extract_strided_slice %7 {offsets = [40, 128], sizes = [8, 128], strides = [1, 1]} : vector<64x256xf32> to vector<8x128xf32>
    %123 = vector.extract_strided_slice %118 {offsets = [0, 128], sizes = [8, 128], strides = [1, 1]} : vector<8x256xf32> to vector<8x128xf32>
    %124 = arith.addf %122, %123 : vector<8x128xf32>
    %125 = arith.negf %121 : vector<8x128xf32>
    %126 = math.exp %125 : vector<8x128xf32>
    %cst_17 = arith.constant 1.000000e+00 : f32
    %127 = vector.broadcast %cst_17 : f32 to vector<8x128xf32>
    %128 = arith.addf %127, %126 : vector<8x128xf32>
    %129 = arith.divf %127, %128 : vector<8x128xf32>
    %130 = math.tanh %121 : vector<8x128xf32>
    %131 = vector.extract_strided_slice %129 {offsets = [0, 0], sizes = [8, 32], strides = [1, 1]} : vector<8x128xf32> to vector<8x32xf32>
    %132 = vector.extract_strided_slice %129 {offsets = [0, 32], sizes = [8, 32], strides = [1, 1]} : vector<8x128xf32> to vector<8x32xf32>
    %133 = vector.extract_strided_slice %130 {offsets = [0, 64], sizes = [8, 32], strides = [1, 1]} : vector<8x128xf32> to vector<8x32xf32>
    %134 = vector.extract_strided_slice %129 {offsets = [0, 96], sizes = [8, 32], strides = [1, 1]} : vector<8x128xf32> to vector<8x32xf32>
    %135 = arith.mulf %132, %110 : vector<8x32xf32>
    %136 = arith.mulf %131, %133 : vector<8x32xf32>
    %137 = arith.addf %135, %136 : vector<8x32xf32>
    %138 = math.tanh %137 : vector<8x32xf32>
    %139 = arith.mulf %134, %138 : vector<8x32xf32>
    %140 = arith.negf %124 : vector<8x128xf32>
    %141 = math.exp %140 : vector<8x128xf32>
    %cst_18 = arith.constant 1.000000e+00 : f32
    %142 = vector.broadcast %cst_18 : f32 to vector<8x128xf32>
    %143 = arith.addf %142, %141 : vector<8x128xf32>
    %144 = arith.divf %142, %143 : vector<8x128xf32>
    %145 = math.tanh %124 : vector<8x128xf32>
    %146 = vector.extract_strided_slice %144 {offsets = [0, 0], sizes = [8, 32], strides = [1, 1]} : vector<8x128xf32> to vector<8x32xf32>
    %147 = vector.extract_strided_slice %144 {offsets = [0, 32], sizes = [8, 32], strides = [1, 1]} : vector<8x128xf32> to vector<8x32xf32>
    %148 = vector.extract_strided_slice %145 {offsets = [0, 64], sizes = [8, 32], strides = [1, 1]} : vector<8x128xf32> to vector<8x32xf32>
    %149 = vector.extract_strided_slice %144 {offsets = [0, 96], sizes = [8, 32], strides = [1, 1]} : vector<8x128xf32> to vector<8x32xf32>
    %150 = arith.mulf %147, %116 : vector<8x32xf32>
    %151 = arith.mulf %146, %148 : vector<8x32xf32>
    %152 = arith.addf %150, %151 : vector<8x32xf32>
    %153 = math.tanh %152 : vector<8x32xf32>
    %154 = arith.mulf %149, %153 : vector<8x32xf32>
    %c2_i32 = arith.constant 2 : i32
    %155 = vector.broadcast %c2_i32 : i32 to vector<8x1xi32>
    %156 = arith.cmpi sgt, %0, %155 : vector<8x1xi32>
    %c5_i32 = arith.constant 5 : i32
    %157 = vector.broadcast %c5_i32 : i32 to vector<8x1xi32>
    %158 = arith.cmpi sgt, %0, %157 : vector<8x1xi32>
    %159 = vector.shape_cast %156 : vector<8x1xi1> to vector<8x1xi1>
    %160 = vector.broadcast %159 : vector<8x1xi1> to vector<8x32xi1>
    %161 = arith.select %160, %139, %107 : vector<8x32xi1>, vector<8x32xf32>
    %162 = vector.shape_cast %156 : vector<8x1xi1> to vector<8x1xi1>
    %163 = vector.broadcast %162 : vector<8x1xi1> to vector<8x32xi1>
    %164 = arith.select %163, %137, %110 : vector<8x32xi1>, vector<8x32xf32>
    %165 = vector.shape_cast %158 : vector<8x1xi1> to vector<8x1xi1>
    %166 = vector.broadcast %165 : vector<8x1xi1> to vector<8x32xi1>
    %167 = arith.select %166, %154, %113 : vector<8x32xi1>, vector<8x32xf32>
    %168 = vector.shape_cast %158 : vector<8x1xi1> to vector<8x1xi1>
    %169 = vector.broadcast %168 : vector<8x1xi1> to vector<8x32xi1>
    %170 = arith.select %169, %152, %116 : vector<8x32xi1>, vector<8x32xf32>
    %171 = tpu.concatenate %161, %167 in 1 : vector<8x32xf32>, vector<8x32xf32> -> vector<8x64xf32>
    %cst_19 = arith.constant dense<0.000000e+00> : vector<8x256xf32>
    %172 = tpu.matmul %171, %1, %cst_19 {dimension_numbers = #tpu.dot_dimension_numbers<[1], [0], [0], [1], [0, 0, 1, 1], [], []>} : vector<8x64xf32>, vector<64x256xf32>, vector<8x256xf32> -> vector<8x256xf32>
    %173 = vector.extract_strided_slice %7 {offsets = [24, 0], sizes = [8, 128], strides = [1, 1]} : vector<64x256xf32> to vector<8x128xf32>
    %174 = vector.extract_strided_slice %172 {offsets = [0, 0], sizes = [8, 128], strides = [1, 1]} : vector<8x256xf32> to vector<8x128xf32>
    %175 = arith.addf %173, %174 : vector<8x128xf32>
    %176 = vector.extract_strided_slice %7 {offsets = [32, 128], sizes = [8, 128], strides = [1, 1]} : vector<64x256xf32> to vector<8x128xf32>
    %177 = vector.extract_strided_slice %172 {offsets = [0, 128], sizes = [8, 128], strides = [1, 1]} : vector<8x256xf32> to vector<8x128xf32>
    %178 = arith.addf %176, %177 : vector<8x128xf32>
    %179 = arith.negf %175 : vector<8x128xf32>
    %180 = math.exp %179 : vector<8x128xf32>
    %cst_20 = arith.constant 1.000000e+00 : f32
    %181 = vector.broadcast %cst_20 : f32 to vector<8x128xf32>
    %182 = arith.addf %181, %180 : vector<8x128xf32>
    %183 = arith.divf %181, %182 : vector<8x128xf32>
    %184 = math.tanh %175 : vector<8x128xf32>
    %185 = vector.extract_strided_slice %183 {offsets = [0, 0], sizes = [8, 32], strides = [1, 1]} : vector<8x128xf32> to vector<8x32xf32>
    %186 = vector.extract_strided_slice %183 {offsets = [0, 32], sizes = [8, 32], strides = [1, 1]} : vector<8x128xf32> to vector<8x32xf32>
    %187 = vector.extract_strided_slice %184 {offsets = [0, 64], sizes = [8, 32], strides = [1, 1]} : vector<8x128xf32> to vector<8x32xf32>
    %188 = vector.extract_strided_slice %183 {offsets = [0, 96], sizes = [8, 32], strides = [1, 1]} : vector<8x128xf32> to vector<8x32xf32>
    %189 = arith.mulf %186, %164 : vector<8x32xf32>
    %190 = arith.mulf %185, %187 : vector<8x32xf32>
    %191 = arith.addf %189, %190 : vector<8x32xf32>
    %192 = math.tanh %191 : vector<8x32xf32>
    %193 = arith.mulf %188, %192 : vector<8x32xf32>
    %194 = arith.negf %178 : vector<8x128xf32>
    %195 = math.exp %194 : vector<8x128xf32>
    %cst_21 = arith.constant 1.000000e+00 : f32
    %196 = vector.broadcast %cst_21 : f32 to vector<8x128xf32>
    %197 = arith.addf %196, %195 : vector<8x128xf32>
    %198 = arith.divf %196, %197 : vector<8x128xf32>
    %199 = math.tanh %178 : vector<8x128xf32>
    %200 = vector.extract_strided_slice %198 {offsets = [0, 0], sizes = [8, 32], strides = [1, 1]} : vector<8x128xf32> to vector<8x32xf32>
    %201 = vector.extract_strided_slice %198 {offsets = [0, 32], sizes = [8, 32], strides = [1, 1]} : vector<8x128xf32> to vector<8x32xf32>
    %202 = vector.extract_strided_slice %199 {offsets = [0, 64], sizes = [8, 32], strides = [1, 1]} : vector<8x128xf32> to vector<8x32xf32>
    %203 = vector.extract_strided_slice %198 {offsets = [0, 96], sizes = [8, 32], strides = [1, 1]} : vector<8x128xf32> to vector<8x32xf32>
    %204 = arith.mulf %201, %170 : vector<8x32xf32>
    %205 = arith.mulf %200, %202 : vector<8x32xf32>
    %206 = arith.addf %204, %205 : vector<8x32xf32>
    %207 = math.tanh %206 : vector<8x32xf32>
    %208 = arith.mulf %203, %207 : vector<8x32xf32>
    %c3_i32 = arith.constant 3 : i32
    %209 = vector.broadcast %c3_i32 : i32 to vector<8x1xi32>
    %210 = arith.cmpi sgt, %0, %209 : vector<8x1xi32>
    %c4_i32 = arith.constant 4 : i32
    %211 = vector.broadcast %c4_i32 : i32 to vector<8x1xi32>
    %212 = arith.cmpi sgt, %0, %211 : vector<8x1xi32>
    %213 = vector.shape_cast %210 : vector<8x1xi1> to vector<8x1xi1>
    %214 = vector.broadcast %213 : vector<8x1xi1> to vector<8x32xi1>
    %215 = arith.select %214, %193, %161 : vector<8x32xi1>, vector<8x32xf32>
    %216 = vector.shape_cast %210 : vector<8x1xi1> to vector<8x1xi1>
    %217 = vector.broadcast %216 : vector<8x1xi1> to vector<8x32xi1>
    %218 = arith.select %217, %191, %164 : vector<8x32xi1>, vector<8x32xf32>
    %219 = vector.shape_cast %212 : vector<8x1xi1> to vector<8x1xi1>
    %220 = vector.broadcast %219 : vector<8x1xi1> to vector<8x32xi1>
    %221 = arith.select %220, %208, %167 : vector<8x32xi1>, vector<8x32xf32>
    %222 = vector.shape_cast %212 : vector<8x1xi1> to vector<8x1xi1>
    %223 = vector.broadcast %222 : vector<8x1xi1> to vector<8x32xi1>
    %224 = arith.select %223, %206, %170 : vector<8x32xi1>, vector<8x32xf32>
    %225 = tpu.concatenate %215, %221 in 1 : vector<8x32xf32>, vector<8x32xf32> -> vector<8x64xf32>
    %cst_22 = arith.constant dense<0.000000e+00> : vector<8x256xf32>
    %226 = tpu.matmul %225, %1, %cst_22 {dimension_numbers = #tpu.dot_dimension_numbers<[1], [0], [0], [1], [0, 0, 1, 1], [], []>} : vector<8x64xf32>, vector<64x256xf32>, vector<8x256xf32> -> vector<8x256xf32>
    %227 = vector.extract_strided_slice %7 {offsets = [32, 0], sizes = [8, 128], strides = [1, 1]} : vector<64x256xf32> to vector<8x128xf32>
    %228 = vector.extract_strided_slice %226 {offsets = [0, 0], sizes = [8, 128], strides = [1, 1]} : vector<8x256xf32> to vector<8x128xf32>
    %229 = arith.addf %227, %228 : vector<8x128xf32>
    %230 = vector.extract_strided_slice %7 {offsets = [24, 128], sizes = [8, 128], strides = [1, 1]} : vector<64x256xf32> to vector<8x128xf32>
    %231 = vector.extract_strided_slice %226 {offsets = [0, 128], sizes = [8, 128], strides = [1, 1]} : vector<8x256xf32> to vector<8x128xf32>
    %232 = arith.addf %230, %231 : vector<8x128xf32>
    %233 = arith.negf %229 : vector<8x128xf32>
    %234 = math.exp %233 : vector<8x128xf32>
    %cst_23 = arith.constant 1.000000e+00 : f32
    %235 = vector.broadcast %cst_23 : f32 to vector<8x128xf32>
    %236 = arith.addf %235, %234 : vector<8x128xf32>
    %237 = arith.divf %235, %236 : vector<8x128xf32>
    %238 = math.tanh %229 : vector<8x128xf32>
    %239 = vector.extract_strided_slice %237 {offsets = [0, 0], sizes = [8, 32], strides = [1, 1]} : vector<8x128xf32> to vector<8x32xf32>
    %240 = vector.extract_strided_slice %237 {offsets = [0, 32], sizes = [8, 32], strides = [1, 1]} : vector<8x128xf32> to vector<8x32xf32>
    %241 = vector.extract_strided_slice %238 {offsets = [0, 64], sizes = [8, 32], strides = [1, 1]} : vector<8x128xf32> to vector<8x32xf32>
    %242 = vector.extract_strided_slice %237 {offsets = [0, 96], sizes = [8, 32], strides = [1, 1]} : vector<8x128xf32> to vector<8x32xf32>
    %243 = arith.mulf %240, %218 : vector<8x32xf32>
    %244 = arith.mulf %239, %241 : vector<8x32xf32>
    %245 = arith.addf %243, %244 : vector<8x32xf32>
    %246 = math.tanh %245 : vector<8x32xf32>
    %247 = arith.mulf %242, %246 : vector<8x32xf32>
    %248 = arith.negf %232 : vector<8x128xf32>
    %249 = math.exp %248 : vector<8x128xf32>
    %cst_24 = arith.constant 1.000000e+00 : f32
    %250 = vector.broadcast %cst_24 : f32 to vector<8x128xf32>
    %251 = arith.addf %250, %249 : vector<8x128xf32>
    %252 = arith.divf %250, %251 : vector<8x128xf32>
    %253 = math.tanh %232 : vector<8x128xf32>
    %254 = vector.extract_strided_slice %252 {offsets = [0, 0], sizes = [8, 32], strides = [1, 1]} : vector<8x128xf32> to vector<8x32xf32>
    %255 = vector.extract_strided_slice %252 {offsets = [0, 32], sizes = [8, 32], strides = [1, 1]} : vector<8x128xf32> to vector<8x32xf32>
    %256 = vector.extract_strided_slice %253 {offsets = [0, 64], sizes = [8, 32], strides = [1, 1]} : vector<8x128xf32> to vector<8x32xf32>
    %257 = vector.extract_strided_slice %252 {offsets = [0, 96], sizes = [8, 32], strides = [1, 1]} : vector<8x128xf32> to vector<8x32xf32>
    %258 = arith.mulf %255, %224 : vector<8x32xf32>
    %259 = arith.mulf %254, %256 : vector<8x32xf32>
    %260 = arith.addf %258, %259 : vector<8x32xf32>
    %261 = math.tanh %260 : vector<8x32xf32>
    %262 = arith.mulf %257, %261 : vector<8x32xf32>
    %c4_i32_25 = arith.constant 4 : i32
    %263 = vector.broadcast %c4_i32_25 : i32 to vector<8x1xi32>
    %264 = arith.cmpi sgt, %0, %263 : vector<8x1xi32>
    %c3_i32_26 = arith.constant 3 : i32
    %265 = vector.broadcast %c3_i32_26 : i32 to vector<8x1xi32>
    %266 = arith.cmpi sgt, %0, %265 : vector<8x1xi32>
    %267 = vector.shape_cast %264 : vector<8x1xi1> to vector<8x1xi1>
    %268 = vector.broadcast %267 : vector<8x1xi1> to vector<8x32xi1>
    %269 = arith.select %268, %247, %215 : vector<8x32xi1>, vector<8x32xf32>
    %270 = vector.shape_cast %264 : vector<8x1xi1> to vector<8x1xi1>
    %271 = vector.broadcast %270 : vector<8x1xi1> to vector<8x32xi1>
    %272 = arith.select %271, %245, %218 : vector<8x32xi1>, vector<8x32xf32>
    %273 = vector.shape_cast %266 : vector<8x1xi1> to vector<8x1xi1>
    %274 = vector.broadcast %273 : vector<8x1xi1> to vector<8x32xi1>
    %275 = arith.select %274, %262, %221 : vector<8x32xi1>, vector<8x32xf32>
    %276 = vector.shape_cast %266 : vector<8x1xi1> to vector<8x1xi1>
    %277 = vector.broadcast %276 : vector<8x1xi1> to vector<8x32xi1>
    %278 = arith.select %277, %260, %224 : vector<8x32xi1>, vector<8x32xf32>
    %279 = tpu.concatenate %269, %275 in 1 : vector<8x32xf32>, vector<8x32xf32> -> vector<8x64xf32>
    %cst_27 = arith.constant dense<0.000000e+00> : vector<8x256xf32>
    %280 = tpu.matmul %279, %1, %cst_27 {dimension_numbers = #tpu.dot_dimension_numbers<[1], [0], [0], [1], [0, 0, 1, 1], [], []>} : vector<8x64xf32>, vector<64x256xf32>, vector<8x256xf32> -> vector<8x256xf32>
    %281 = vector.extract_strided_slice %7 {offsets = [40, 0], sizes = [8, 128], strides = [1, 1]} : vector<64x256xf32> to vector<8x128xf32>
    %282 = vector.extract_strided_slice %280 {offsets = [0, 0], sizes = [8, 128], strides = [1, 1]} : vector<8x256xf32> to vector<8x128xf32>
    %283 = arith.addf %281, %282 : vector<8x128xf32>
    %284 = vector.extract_strided_slice %7 {offsets = [16, 128], sizes = [8, 128], strides = [1, 1]} : vector<64x256xf32> to vector<8x128xf32>
    %285 = vector.extract_strided_slice %280 {offsets = [0, 128], sizes = [8, 128], strides = [1, 1]} : vector<8x256xf32> to vector<8x128xf32>
    %286 = arith.addf %284, %285 : vector<8x128xf32>
    %287 = arith.negf %283 : vector<8x128xf32>
    %288 = math.exp %287 : vector<8x128xf32>
    %cst_28 = arith.constant 1.000000e+00 : f32
    %289 = vector.broadcast %cst_28 : f32 to vector<8x128xf32>
    %290 = arith.addf %289, %288 : vector<8x128xf32>
    %291 = arith.divf %289, %290 : vector<8x128xf32>
    %292 = math.tanh %283 : vector<8x128xf32>
    %293 = vector.extract_strided_slice %291 {offsets = [0, 0], sizes = [8, 32], strides = [1, 1]} : vector<8x128xf32> to vector<8x32xf32>
    %294 = vector.extract_strided_slice %291 {offsets = [0, 32], sizes = [8, 32], strides = [1, 1]} : vector<8x128xf32> to vector<8x32xf32>
    %295 = vector.extract_strided_slice %292 {offsets = [0, 64], sizes = [8, 32], strides = [1, 1]} : vector<8x128xf32> to vector<8x32xf32>
    %296 = vector.extract_strided_slice %291 {offsets = [0, 96], sizes = [8, 32], strides = [1, 1]} : vector<8x128xf32> to vector<8x32xf32>
    %297 = arith.mulf %294, %272 : vector<8x32xf32>
    %298 = arith.mulf %293, %295 : vector<8x32xf32>
    %299 = arith.addf %297, %298 : vector<8x32xf32>
    %300 = math.tanh %299 : vector<8x32xf32>
    %301 = arith.mulf %296, %300 : vector<8x32xf32>
    %302 = arith.negf %286 : vector<8x128xf32>
    %303 = math.exp %302 : vector<8x128xf32>
    %cst_29 = arith.constant 1.000000e+00 : f32
    %304 = vector.broadcast %cst_29 : f32 to vector<8x128xf32>
    %305 = arith.addf %304, %303 : vector<8x128xf32>
    %306 = arith.divf %304, %305 : vector<8x128xf32>
    %307 = math.tanh %286 : vector<8x128xf32>
    %308 = vector.extract_strided_slice %306 {offsets = [0, 0], sizes = [8, 32], strides = [1, 1]} : vector<8x128xf32> to vector<8x32xf32>
    %309 = vector.extract_strided_slice %306 {offsets = [0, 32], sizes = [8, 32], strides = [1, 1]} : vector<8x128xf32> to vector<8x32xf32>
    %310 = vector.extract_strided_slice %307 {offsets = [0, 64], sizes = [8, 32], strides = [1, 1]} : vector<8x128xf32> to vector<8x32xf32>
    %311 = vector.extract_strided_slice %306 {offsets = [0, 96], sizes = [8, 32], strides = [1, 1]} : vector<8x128xf32> to vector<8x32xf32>
    %312 = arith.mulf %309, %278 : vector<8x32xf32>
    %313 = arith.mulf %308, %310 : vector<8x32xf32>
    %314 = arith.addf %312, %313 : vector<8x32xf32>
    %315 = math.tanh %314 : vector<8x32xf32>
    %316 = arith.mulf %311, %315 : vector<8x32xf32>
    %c5_i32_30 = arith.constant 5 : i32
    %317 = vector.broadcast %c5_i32_30 : i32 to vector<8x1xi32>
    %318 = arith.cmpi sgt, %0, %317 : vector<8x1xi32>
    %c2_i32_31 = arith.constant 2 : i32
    %319 = vector.broadcast %c2_i32_31 : i32 to vector<8x1xi32>
    %320 = arith.cmpi sgt, %0, %319 : vector<8x1xi32>
    %321 = vector.shape_cast %318 : vector<8x1xi1> to vector<8x1xi1>
    %322 = vector.broadcast %321 : vector<8x1xi1> to vector<8x32xi1>
    %323 = arith.select %322, %301, %269 : vector<8x32xi1>, vector<8x32xf32>
    %324 = vector.shape_cast %318 : vector<8x1xi1> to vector<8x1xi1>
    %325 = vector.broadcast %324 : vector<8x1xi1> to vector<8x32xi1>
    %326 = arith.select %325, %299, %272 : vector<8x32xi1>, vector<8x32xf32>
    %327 = vector.shape_cast %320 : vector<8x1xi1> to vector<8x1xi1>
    %328 = vector.broadcast %327 : vector<8x1xi1> to vector<8x32xi1>
    %329 = arith.select %328, %316, %275 : vector<8x32xi1>, vector<8x32xf32>
    %330 = vector.shape_cast %320 : vector<8x1xi1> to vector<8x1xi1>
    %331 = vector.broadcast %330 : vector<8x1xi1> to vector<8x32xi1>
    %332 = arith.select %331, %314, %278 : vector<8x32xi1>, vector<8x32xf32>
    %333 = tpu.concatenate %323, %329 in 1 : vector<8x32xf32>, vector<8x32xf32> -> vector<8x64xf32>
    %cst_32 = arith.constant dense<0.000000e+00> : vector<8x256xf32>
    %334 = tpu.matmul %333, %1, %cst_32 {dimension_numbers = #tpu.dot_dimension_numbers<[1], [0], [0], [1], [0, 0, 1, 1], [], []>} : vector<8x64xf32>, vector<64x256xf32>, vector<8x256xf32> -> vector<8x256xf32>
    %335 = vector.extract_strided_slice %7 {offsets = [48, 0], sizes = [8, 128], strides = [1, 1]} : vector<64x256xf32> to vector<8x128xf32>
    %336 = vector.extract_strided_slice %334 {offsets = [0, 0], sizes = [8, 128], strides = [1, 1]} : vector<8x256xf32> to vector<8x128xf32>
    %337 = arith.addf %335, %336 : vector<8x128xf32>
    %338 = vector.extract_strided_slice %7 {offsets = [8, 128], sizes = [8, 128], strides = [1, 1]} : vector<64x256xf32> to vector<8x128xf32>
    %339 = vector.extract_strided_slice %334 {offsets = [0, 128], sizes = [8, 128], strides = [1, 1]} : vector<8x256xf32> to vector<8x128xf32>
    %340 = arith.addf %338, %339 : vector<8x128xf32>
    %341 = arith.negf %337 : vector<8x128xf32>
    %342 = math.exp %341 : vector<8x128xf32>
    %cst_33 = arith.constant 1.000000e+00 : f32
    %343 = vector.broadcast %cst_33 : f32 to vector<8x128xf32>
    %344 = arith.addf %343, %342 : vector<8x128xf32>
    %345 = arith.divf %343, %344 : vector<8x128xf32>
    %346 = math.tanh %337 : vector<8x128xf32>
    %347 = vector.extract_strided_slice %345 {offsets = [0, 0], sizes = [8, 32], strides = [1, 1]} : vector<8x128xf32> to vector<8x32xf32>
    %348 = vector.extract_strided_slice %345 {offsets = [0, 32], sizes = [8, 32], strides = [1, 1]} : vector<8x128xf32> to vector<8x32xf32>
    %349 = vector.extract_strided_slice %346 {offsets = [0, 64], sizes = [8, 32], strides = [1, 1]} : vector<8x128xf32> to vector<8x32xf32>
    %350 = vector.extract_strided_slice %345 {offsets = [0, 96], sizes = [8, 32], strides = [1, 1]} : vector<8x128xf32> to vector<8x32xf32>
    %351 = arith.mulf %348, %326 : vector<8x32xf32>
    %352 = arith.mulf %347, %349 : vector<8x32xf32>
    %353 = arith.addf %351, %352 : vector<8x32xf32>
    %354 = math.tanh %353 : vector<8x32xf32>
    %355 = arith.mulf %350, %354 : vector<8x32xf32>
    %356 = arith.negf %340 : vector<8x128xf32>
    %357 = math.exp %356 : vector<8x128xf32>
    %cst_34 = arith.constant 1.000000e+00 : f32
    %358 = vector.broadcast %cst_34 : f32 to vector<8x128xf32>
    %359 = arith.addf %358, %357 : vector<8x128xf32>
    %360 = arith.divf %358, %359 : vector<8x128xf32>
    %361 = math.tanh %340 : vector<8x128xf32>
    %362 = vector.extract_strided_slice %360 {offsets = [0, 0], sizes = [8, 32], strides = [1, 1]} : vector<8x128xf32> to vector<8x32xf32>
    %363 = vector.extract_strided_slice %360 {offsets = [0, 32], sizes = [8, 32], strides = [1, 1]} : vector<8x128xf32> to vector<8x32xf32>
    %364 = vector.extract_strided_slice %361 {offsets = [0, 64], sizes = [8, 32], strides = [1, 1]} : vector<8x128xf32> to vector<8x32xf32>
    %365 = vector.extract_strided_slice %360 {offsets = [0, 96], sizes = [8, 32], strides = [1, 1]} : vector<8x128xf32> to vector<8x32xf32>
    %366 = arith.mulf %363, %332 : vector<8x32xf32>
    %367 = arith.mulf %362, %364 : vector<8x32xf32>
    %368 = arith.addf %366, %367 : vector<8x32xf32>
    %369 = math.tanh %368 : vector<8x32xf32>
    %370 = arith.mulf %365, %369 : vector<8x32xf32>
    %c6_i32_35 = arith.constant 6 : i32
    %371 = vector.broadcast %c6_i32_35 : i32 to vector<8x1xi32>
    %372 = arith.cmpi sgt, %0, %371 : vector<8x1xi32>
    %c1_i32_36 = arith.constant 1 : i32
    %373 = vector.broadcast %c1_i32_36 : i32 to vector<8x1xi32>
    %374 = arith.cmpi sgt, %0, %373 : vector<8x1xi32>
    %375 = vector.shape_cast %372 : vector<8x1xi1> to vector<8x1xi1>
    %376 = vector.broadcast %375 : vector<8x1xi1> to vector<8x32xi1>
    %377 = arith.select %376, %355, %323 : vector<8x32xi1>, vector<8x32xf32>
    %378 = vector.shape_cast %372 : vector<8x1xi1> to vector<8x1xi1>
    %379 = vector.broadcast %378 : vector<8x1xi1> to vector<8x32xi1>
    %380 = arith.select %379, %353, %326 : vector<8x32xi1>, vector<8x32xf32>
    %381 = vector.shape_cast %374 : vector<8x1xi1> to vector<8x1xi1>
    %382 = vector.broadcast %381 : vector<8x1xi1> to vector<8x32xi1>
    %383 = arith.select %382, %370, %329 : vector<8x32xi1>, vector<8x32xf32>
    %384 = vector.shape_cast %374 : vector<8x1xi1> to vector<8x1xi1>
    %385 = vector.broadcast %384 : vector<8x1xi1> to vector<8x32xi1>
    %386 = arith.select %385, %368, %332 : vector<8x32xi1>, vector<8x32xf32>
    %387 = tpu.concatenate %377, %383 in 1 : vector<8x32xf32>, vector<8x32xf32> -> vector<8x64xf32>
    %cst_37 = arith.constant dense<0.000000e+00> : vector<8x256xf32>
    %388 = tpu.matmul %387, %1, %cst_37 {dimension_numbers = #tpu.dot_dimension_numbers<[1], [0], [0], [1], [0, 0, 1, 1], [], []>} : vector<8x64xf32>, vector<64x256xf32>, vector<8x256xf32> -> vector<8x256xf32>
    %389 = vector.extract_strided_slice %7 {offsets = [56, 0], sizes = [8, 128], strides = [1, 1]} : vector<64x256xf32> to vector<8x128xf32>
    %390 = vector.extract_strided_slice %388 {offsets = [0, 0], sizes = [8, 128], strides = [1, 1]} : vector<8x256xf32> to vector<8x128xf32>
    %391 = arith.addf %389, %390 : vector<8x128xf32>
    %392 = vector.extract_strided_slice %7 {offsets = [0, 128], sizes = [8, 128], strides = [1, 1]} : vector<64x256xf32> to vector<8x128xf32>
    %393 = vector.extract_strided_slice %388 {offsets = [0, 128], sizes = [8, 128], strides = [1, 1]} : vector<8x256xf32> to vector<8x128xf32>
    %394 = arith.addf %392, %393 : vector<8x128xf32>
    %395 = arith.negf %391 : vector<8x128xf32>
    %396 = math.exp %395 : vector<8x128xf32>
    %cst_38 = arith.constant 1.000000e+00 : f32
    %397 = vector.broadcast %cst_38 : f32 to vector<8x128xf32>
    %398 = arith.addf %397, %396 : vector<8x128xf32>
    %399 = arith.divf %397, %398 : vector<8x128xf32>
    %400 = math.tanh %391 : vector<8x128xf32>
    %401 = vector.extract_strided_slice %399 {offsets = [0, 0], sizes = [8, 32], strides = [1, 1]} : vector<8x128xf32> to vector<8x32xf32>
    %402 = vector.extract_strided_slice %399 {offsets = [0, 32], sizes = [8, 32], strides = [1, 1]} : vector<8x128xf32> to vector<8x32xf32>
    %403 = vector.extract_strided_slice %400 {offsets = [0, 64], sizes = [8, 32], strides = [1, 1]} : vector<8x128xf32> to vector<8x32xf32>
    %404 = vector.extract_strided_slice %399 {offsets = [0, 96], sizes = [8, 32], strides = [1, 1]} : vector<8x128xf32> to vector<8x32xf32>
    %405 = arith.mulf %402, %380 : vector<8x32xf32>
    %406 = arith.mulf %401, %403 : vector<8x32xf32>
    %407 = arith.addf %405, %406 : vector<8x32xf32>
    %408 = math.tanh %407 : vector<8x32xf32>
    %409 = arith.mulf %404, %408 : vector<8x32xf32>
    %410 = arith.negf %394 : vector<8x128xf32>
    %411 = math.exp %410 : vector<8x128xf32>
    %cst_39 = arith.constant 1.000000e+00 : f32
    %412 = vector.broadcast %cst_39 : f32 to vector<8x128xf32>
    %413 = arith.addf %412, %411 : vector<8x128xf32>
    %414 = arith.divf %412, %413 : vector<8x128xf32>
    %415 = math.tanh %394 : vector<8x128xf32>
    %416 = vector.extract_strided_slice %414 {offsets = [0, 0], sizes = [8, 32], strides = [1, 1]} : vector<8x128xf32> to vector<8x32xf32>
    %417 = vector.extract_strided_slice %414 {offsets = [0, 32], sizes = [8, 32], strides = [1, 1]} : vector<8x128xf32> to vector<8x32xf32>
    %418 = vector.extract_strided_slice %415 {offsets = [0, 64], sizes = [8, 32], strides = [1, 1]} : vector<8x128xf32> to vector<8x32xf32>
    %419 = vector.extract_strided_slice %414 {offsets = [0, 96], sizes = [8, 32], strides = [1, 1]} : vector<8x128xf32> to vector<8x32xf32>
    %420 = arith.mulf %417, %386 : vector<8x32xf32>
    %421 = arith.mulf %416, %418 : vector<8x32xf32>
    %422 = arith.addf %420, %421 : vector<8x32xf32>
    %423 = math.tanh %422 : vector<8x32xf32>
    %424 = arith.mulf %419, %423 : vector<8x32xf32>
    %c7_i32_40 = arith.constant 7 : i32
    %425 = vector.broadcast %c7_i32_40 : i32 to vector<8x1xi32>
    %426 = arith.cmpi sgt, %0, %425 : vector<8x1xi32>
    %c0_i32_41 = arith.constant 0 : i32
    %427 = vector.broadcast %c0_i32_41 : i32 to vector<8x1xi32>
    %428 = arith.cmpi sgt, %0, %427 : vector<8x1xi32>
    %429 = vector.shape_cast %426 : vector<8x1xi1> to vector<8x1xi1>
    %430 = vector.broadcast %429 : vector<8x1xi1> to vector<8x32xi1>
    %431 = arith.select %430, %409, %377 : vector<8x32xi1>, vector<8x32xf32>
    %432 = vector.shape_cast %428 : vector<8x1xi1> to vector<8x1xi1>
    %433 = vector.broadcast %432 : vector<8x1xi1> to vector<8x32xi1>
    %434 = arith.select %433, %424, %383 : vector<8x32xi1>, vector<8x32xf32>
    %c0_42 = arith.constant 0 : index
    %c0_43 = arith.constant 0 : index
    %435 = vector.load %arg2[%c0_42, %c0_43] : memref<8x32xf32, #tpu.memory_space<vmem>>, vector<8x32xf32>
    %436 = math.tanh %435 : vector<8x32xf32>
    %c0_44 = arith.constant 0 : index
    %c0_45 = arith.constant 0 : index
    %437 = vector.load %arg6[%c0_44, %c0_45] : memref<96x32xf32, #tpu.memory_space<vmem>>, vector<96x32xf32>
    %438 = vector.extract_strided_slice %437 {offsets = [0, 0], sizes = [32, 32], strides = [1, 1]} : vector<96x32xf32> to vector<32x32xf32>
    %cst_46 = arith.constant dense<0.000000e+00> : vector<8x32xf32>
    %439 = tpu.matmul %431, %438, %cst_46 {dimension_numbers = #tpu.dot_dimension_numbers<[1], [0], [0], [1], [0, 0, 1, 1], [], []>} : vector<8x32xf32>, vector<32x32xf32>, vector<8x32xf32> -> vector<8x32xf32>
    %440 = vector.extract_strided_slice %437 {offsets = [32, 0], sizes = [32, 32], strides = [1, 1]} : vector<96x32xf32> to vector<32x32xf32>
    %cst_47 = arith.constant dense<0.000000e+00> : vector<8x32xf32>
    %441 = tpu.matmul %434, %440, %cst_47 {dimension_numbers = #tpu.dot_dimension_numbers<[1], [0], [0], [1], [0, 0, 1, 1], [], []>} : vector<8x32xf32>, vector<32x32xf32>, vector<8x32xf32> -> vector<8x32xf32>
    %442 = arith.addf %439, %441 : vector<8x32xf32>
    %443 = vector.extract_strided_slice %437 {offsets = [64, 0], sizes = [32, 32], strides = [1, 1]} : vector<96x32xf32> to vector<32x32xf32>
    %cst_48 = arith.constant dense<0.000000e+00> : vector<8x32xf32>
    %444 = tpu.matmul %436, %443, %cst_48 {dimension_numbers = #tpu.dot_dimension_numbers<[1], [0], [0], [1], [0, 0, 1, 1], [], []>} : vector<8x32xf32>, vector<32x32xf32>, vector<8x32xf32> -> vector<8x32xf32>
    %445 = arith.addf %442, %444 : vector<8x32xf32>
    %c0_49 = arith.constant 0 : index
    %c0_50 = arith.constant 0 : index
    %446 = vector.load %arg7[%c0_49, %c0_50] : memref<3x32xf32, #tpu.memory_space<vmem>>, vector<1x32xf32>
    %447 = vector.broadcast %446 : vector<1x32xf32> to vector<8x32xf32>
    %448 = arith.addf %445, %447 : vector<8x32xf32>
    %cst_51 = arith.constant 0.000000e+00 : f32
    %449 = vector.broadcast %cst_51 : f32 to vector<8x32xf32>
    %450 = arith.maximumf %448, %449 : vector<8x32xf32>
    %451 = math.tanh %450 : vector<8x32xf32>
    %c1 = arith.constant 1 : index
    %c0_52 = arith.constant 0 : index
    %452 = vector.load %arg7[%c1, %c0_52] : memref<3x32xf32, #tpu.memory_space<vmem>>, vector<1x32xf32>
    %453 = vector.broadcast %452 : vector<1x32xf32> to vector<8x32xf32>
    %454 = arith.mulf %451, %453 : vector<8x32xf32>
    %cst_53 = arith.constant dense<0.000000e+00> : vector<8xf32>
    %455 = vector.multi_reduction <add>, %454, %cst_53 [1] : vector<8x32xf32> to vector<8xf32>
    %456 = vector.shape_cast %455 : vector<8xf32> to vector<8x1xf32>
    %c2 = arith.constant 2 : index
    %c0_54 = arith.constant 0 : index
    %457 = vector.load %arg7[%c2, %c0_54] : memref<3x32xf32, #tpu.memory_space<vmem>>, vector<1x1xf32>
    %458 = vector.broadcast %457 : vector<1x1xf32> to vector<8x1xf32>
    %459 = arith.addf %456, %458 : vector<8x1xf32>
    %c0_55 = arith.constant 0 : index
    %c0_56 = arith.constant 0 : index
    %460 = vector.load %arg8[%c0_55, %c0_56] : memref<8x1xf32, #tpu.memory_space<vmem>>, vector<8x1xf32>
    tpu.vector_store %arg8[%c0_55, %c0_56], %459 {strides = array<i32>} : memref<8x1xf32, #tpu.memory_space<vmem>>, vector<8x1xf32>,
    return
  }
}

</mosaic_0001>

<bundles_post_ra>
// kernel: lstm_regr_forward.1
= control target key start
LH: loop header
LB: loop body
LE: loop exit
PB: predicated region body
PF: predicated region fallthrough
CT: control target
= control target key end

     0   :  { %v1992_v3 = vmov 0.0   ;;  %vm74_vm0 = vcmask 261120   ;;  %v1993_v45 = vmov 0   ;;  %v64_v46 = vlaneseq  ;;  %s2639_s3 = inlined_call_operand.vmem [shape: f32[32,256], index: 3, kind: input, shape index: {}]   ;;  %s2640_s4 = inlined_call_operand.vmem [shape: f32[64,256], index: 4, kind: input, shape index: {}]   ;;  %s2641_s0 = inlined_call_operand.vmem [shape: f32[64,32], index: 0, kind: input, shape index: {}]   ;;  %s2642_s5 = inlined_call_operand.vmem [shape: f32[1,256], index: 5, kind: input, shape index: {}]   ;;  %s2643_s1 = inlined_call_operand.vmem [shape: s32[8,1], index: 1, kind: input, shape index: {}]   ;;  %s2644_s6 = inlined_call_operand.vmem [shape: f32[96,32], index: 6, kind: input, shape index: {}]   ;;  %s2645_s2 = inlined_call_operand.vmem [shape: f32[8,32], index: 2, kind: input, shape index: {}]   ;;  %s2646_s7 = inlined_call_operand.vmem [shape: f32[3,32], index: 7, kind: input, shape index: {}]   ;;  %s2647_s8 = inlined_call_operand.vmem [shape: f32[8,1], index: 8, kind: output, shape index: {}]  }
   0x1   :  { %v55_v0 = vld [vmem:[%s2639_s3 + $0x8] sm:$0xff]  ;;  %v57_v1 = vld [vmem:[%s2639_s3 + $0x18] sm:$0xff]  ;;  %163 = vmatprep.mubr.f32.mxu0 %v1992_v3  ;;  %280 = vmatprep.mubr.f32.mxu1 %v1992_v3  ;;  %v54_v6 = vld [vmem:[%s2639_s3] sm:$0xff]  ;;  %vm212_vm5 = vcmask 523264  }
   0x2   :  { %v31_v2 = vld [vmem:[%s2640_s4 + $0x8] sm:$0xff]  ;;  %v1698_v4 = vpack.c.bf16 %v57_v1, %v55_v0  ;;  %v33_v5 = vld [vmem:[%s2640_s4 + $0x18] sm:$0xff]  ;;  %v56_v7 = vld [vmem:[%s2639_s3 + $0x10] sm:$0xff]  ;;  %1858 = vset.pattern.permute.xlu0 %v1993_v45  ;;  %1859 = vset.pattern.permute.xlu1 %v1993_v45  ;;  %v65_v47 = vshrl.u32 %v64_v46, 7 }
   0x3   :  { %v2063_v8 = vpack.c.bf16 %v33_v5, %v31_v2  ;;  %v1700_v9 = vpack.c.bf16 %v56_v7, %v54_v6  ;;  %v30_v10 = vld [vmem:[%s2640_s4] sm:$0xff]  ;;  %v32_v11 = vld [vmem:[%s2640_s4 + $0x10] sm:$0xff]  ;;  %v59_v12 = vld [vmem:[%s2639_s3 + $0x28] sm:$0xff] }
   0x4   :  { %1699 = vmatprep.subr.bf16.mxu0 %v1698_v4  ;;  %v2074_v13 = vpack.c.bf16 %v32_v11, %v30_v10  ;;  %v61_v14 = vld [vmem:[%s2639_s3 + $0x38] sm:$0xff]  ;;  %v35_v15 = vld [vmem:[%s2640_s4 + $0x28] sm:$0xff]  ;;  %v58_v19 = vld [vmem:[%s2639_s3 + $0x20] sm:$0xff]  ;;  %v70_v48 = vsub.s32 1, %v65_v47  ;;  %v66_v51 = vsub.s32 0, %v65_v47 }
   0x5   :  { %v37_v16 = vld [vmem:[%s2640_s4 + $0x38] sm:$0xff]  ;;  %1707 = vmatprep.subr.bf16.mxu1 %v2063_v8  ;;  %1701 = vmatpush1.bf16.msra.mxu0 %v1700_v9  ;;  %v1702_v17 = vpack.c.bf16 %v61_v14, %v59_v12  ;;  %v60_v20 = vld [vmem:[%s2639_s3 + $0x30] sm:$0xff]  ;;  %v34_v21 = vld [vmem:[%s2640_s4 + $0x20] sm:$0xff] }
   0x6   :  { %v2086_v18 = vpack.c.bf16 %v37_v16, %v35_v15  ;;  %1709 = vmatpush1.bf16.msra.mxu1 %v2074_v13  ;;  %v1704_v22 = vpack.c.bf16 %v60_v20, %v58_v19  ;;  %v36_v23 = vld [vmem:[%s2640_s4 + $0x30] sm:$0xff]  ;;  %v39_v24 = vld [vmem:[%s2640_s4 + $0x48] sm:$0xff]  ;;  %v41_v26 = vld [vmem:[%s2640_s4 + $0x58] sm:$0xff] }
   0x7   :  { %1703 = vmatprep.subr.bf16.mxu0 %v1702_v17  ;;  %v2105_v25 = vpack.c.bf16 %v36_v23, %v34_v21  ;;  %v38_v27 = vld [vmem:[%s2640_s4 + $0x40] sm:$0xff]  ;;  %v40_v28 = vld [vmem:[%s2640_s4 + $0x50] sm:$0xff]  ;;  %v2116_v29 = vpack.c.bf16 %v41_v26, %v39_v24  ;;  %v43_v30 = vld [vmem:[%s2640_s4 + $0x68] sm:$0xff] }
   0x8   :  { %1711 = vmatprep.subr.bf16.mxu1 %v2086_v18  ;;  %v45_v31 = vld [vmem:[%s2640_s4 + $0x78] sm:$0xff]  ;;  %v46_v32 = vld [vmem:[%s2641_s0] sm:$0xff]  ;;  %v2128_v33 = vpack.c.bf16 %v40_v28, %v38_v27  ;;  %v44_v36 = vld [vmem:[%s2640_s4 + $0x70] sm:$0xff] }
   0x9   :  { %1705 = vmatpush1.bf16.msra.mxu0 %v1704_v22  ;;  %v2132_v34 = vpack.c.bf16 %v45_v31, %v43_v30  ;;  %v42_v35 = vld [vmem:[%s2640_s4 + $0x60] sm:$0xff]  ;;  %v47_v37 = vld [vmem:[%s2641_s0 + $0x8] sm:$0xff]  ;;  %v48_v39 = vld [vmem:[%s2641_s0 + $0x10] sm:$0xff] }
   0xa   :  { %1713 = vmatpush1.bf16.msra.mxu1 %v2105_v25  ;;  %1739 = vmatprep.subr.bf16.mxu0 %v2063_v8  ;;  %v2147_v38 = vpack.c.bf16 %v44_v36, %v42_v35  ;;  %v49_v40 = vld [vmem:[%s2641_s0 + $0x18] sm:$0xff]  ;;  %v50_v41 = vld [vmem:[%s2641_s0 + $0x20] sm:$0xff]  ;;  %v51_v42 = vld [vmem:[%s2641_s0 + $0x28] sm:$0xff] }
   0xb   :  { %1715 = vmatprep.subr.bf16.mxu1 %v2116_v29  ;;  %v52_v43 = vld [vmem:[%s2641_s0 + $0x30] sm:$0xff]  ;;  %v53_v44 = vld [vmem:[%s2641_s0 + $0x38] sm:$0xff]  ;;  %v62_v49 = vld [vmem:[%s2642_s5] sm:$0x3]  ;;  %s1994_s0 = smov 64  }
   0xc   :  { %1613 = vmatmul.mubr.msk.f32.vlgmr.msra.gmra.mrb[0].mxu0 %vm74_vm0, %v46_v32  ;;  %v71_v50 = vrot.slane %v62_v49, %v70_v48  ;;  %v67_v55 = vrot.slane %v62_v49, %v66_v51  ;;  %v2238_v32 = vld [vmem:[%s2643_s1] sm:$0xff]  ;;  %s1995_s1 = smov 32  }
   0xd   :  { %169 = vmatprep.mubr.f32.mxu0 %v1992_v3  ;;  %1741 = vmatpush1.bf16.msra.mxu0 %v2074_v13  ;;  %vm337_vm1 = vcmp.gt.s32.totalorder %v2238_v32, 0  ;;  %vm338_vm2 = vcmp.gt.s32.totalorder %v2238_v32, 7  ;;  %vm486_vm6 = vcmp.gt.s32.totalorder %v2238_v32, 1  ;;  %vm487_vm7 = vcmp.gt.s32.totalorder %v2238_v32, 6 }
   0xe   :  { %1717 = vmatpush1.bf16.msra.mxu1 %v2128_v33  ;;  %1743 = vmatprep.subr.bf16.mxu0 %v2086_v18  ;;  %v339_v36 = vsel %vm337_vm1, 1, %v1993_v45  ;;  %v346_v51 = vsel %vm338_vm2, 1, %v1993_v45  ;;  %vm635_vm10 = vcmp.gt.s32.totalorder %v2238_v32, 2  ;;  %vm636_vm11 = vcmp.gt.s32.totalorder %v2238_v32, 5 }
   0xf   :  { %1719 = vmatprep.subr.bf16.mxu1 %v2132_v34  ;;  %vm784_vm14 = vcmp.gt.s32.totalorder %v2238_v32, 3  ;;  %vm785_vm15 = vcmp.gt.s32.totalorder %v2238_v32, 4 }
  0x10   :  { %1614 = vmatmul.mubr.msk.f32.gmra.mrb[2].mxu0 %vm74_vm0, %v47_v37 }
  0x11   :  { %175 = vmatprep.mubr.f32.mxu0 %v1992_v3  ;;  %1745 = vmatpush1.bf16.msra.mxu0 %v2105_v25 }
  0x12   :  { %1721 = vmatpush1.bf16.msra.mxu1 %v2147_v38  ;;  %1747 = vmatprep.subr.bf16.mxu0 %v2116_v29 }
  0x13   :  { %1723 = vmatprep.subr.bf16.mxu1 %v2063_v8 }
  0x14   :  { %1615 = vmatmul.mubr.msk.f32.gmra.mrb[4].mxu0 %vm74_vm0, %v48_v39 }
  0x15   :  { %281 = vmatmul.mubr.f32.vlgmr.msra.gmra.mrb[0].mxu1 %v1992_v3  ;;  %181 = vmatprep.mubr.f32.mxu0 %v1992_v3 }
  0x16   :  { %1725 = vmatpush1.bf16.msra.mxu1 %v2074_v13  ;;  %429 = vmatprep.mubr.f32.mxu1 %v1992_v3 }
  0x17   :  { %1727 = vmatprep.subr.bf16.mxu1 %v2086_v18  ;;  %1749 = vmatpush1.bf16.msra.mxu0 %v2128_v33 }
  0x18   :  { %1616 = vmatmul.mubr.msk.f32.gmra.mrb[6].mxu0 %vm74_vm0, %v49_v40  ;;  %1751 = vmatprep.subr.bf16.mxu0 %v2132_v34 }
  0x19   :  { %187 = vmatprep.mubr.f32.mxu0 %v1992_v3 }
  0x1a   :  { %1729 = vmatpush1.bf16.msra.mxu1 %v2105_v25 }
  0x1b   :  { %1731 = vmatprep.subr.bf16.mxu1 %v2116_v29  ;;  %1753 = vmatpush1.bf16.msra.mxu0 %v2147_v38 }
  0x1c   :  { %1617 = vmatmul.mubr.msk.f32.gmra.mrb[8].mxu0 %vm74_vm0, %v50_v41  ;;  %1771 = vmatprep.subr.bf16.mxu0 %v2063_v8 }
  0x1d   :  { %193 = vmatprep.mubr.f32.mxu0 %v1992_v3 }
  0x1e   :  { %1733 = vmatpush1.bf16.msra.mxu1 %v2128_v33 }
  0x1f   :  { %1735 = vmatprep.subr.bf16.mxu1 %v2132_v34 }
  0x20   :  { %1618 = vmatmul.mubr.msk.f32.gmra.mrb[10].mxu0 %vm74_vm0, %v51_v42 }
  0x21   :  { %199 = vmatprep.mubr.f32.mxu0 %v1992_v3 }
  0x22   :  { %1737 = vmatpush1.bf16.msra.mxu1 %v2147_v38 }
  0x23   :  { %1755 = vmatprep.subr.bf16.mxu1 %v2063_v8 }
  0x24   :  { %1619 = vmatmul.mubr.msk.f32.gmra.mrb[12].mxu0 %vm74_vm0, %v52_v43 }
  0x25   :  { %205 = vmatprep.mubr.f32.mxu0 %v1992_v3 }
  0x28   :  { %1620 = vmatmul.mubr.msk.f32.gmra.mrb[14].mxu0 %vm74_vm0, %v53_v44 }
  0x29   :  { %578 = vmatprep.mubr.f32.mxu0 %v1992_v3 }
  0xdf   :  { %v165_v52 = vpop.f32.mrb[0].mxu0 }
  0xe0   :  { %v167_v53 = vpop.f32.mrb[1].mxu0  ;;  %v166_v60 = vadd.f32 %v165_v52, %v67_v55 }
  0xe1   :  { %v2206_v54 = vadd.f32 %v167_v53, %v71_v50 }
  0xe3   :  { %v171_v56 = vpop.f32.mrb[2].mxu0 }
  0xe4   :  { %v2208_v57 = vadd.f32 %v171_v56, %v67_v55  ;;  %v173_v58 = vpop.f32.mrb[3].mxu0 }
  0xe5   :  { %v2210_v59 = vadd.f32 %v173_v58, %v71_v50 }
  0xe7   :  { %v177_v61 = vpop.f32.mrb[4].mxu0 }
  0xe8   :  { %v2212_v62 = vadd.f32 %v177_v61, %v67_v55  ;;  %v282_v63 = vpop.f32.mrb[0].mxu1  ;;  %v179_v0 = vpop.f32.mrb[5].mxu0 }
  0xe9   :  { %v287_v1 = vadd.f32 %v282_v63, %v166_v60  ;;  %v2214_v2 = vadd.f32 %v179_v0, %v71_v50  ;;  %v284_v4 = vpop.f32.mrb[1].mxu1 }
  0xeb   :  { %1860 = vtanh.f32 %v287_v1  ;;  %v183_v5 = vpop.f32.mrb[6].mxu0  ;;  %v1621_v37 = vmul.f32 -1.442695, %v287_v1 }
  0xec   :  { %v2216_v6 = vadd.f32 %v183_v5, %v67_v55  ;;  %v185_v7 = vpop.f32.mrb[7].mxu0 }
  0xed   :  { %v2218_v9 = vadd.f32 %v185_v7, %v71_v50 }
  0xef   :  { %v189_v10 = vpop.f32.mrb[8].mxu0 }
  0xf0   :  { %v2220_v11 = vadd.f32 %v189_v10, %v67_v55  ;;  %v191_v12 = vpop.f32.mrb[9].mxu0 }
  0xf1   :  { %v2222_v14 = vadd.f32 %v191_v12, %v71_v50 }
  0xf3   :  { %v195_v15 = vpop.f32.mrb[10].mxu0 }
  0xf4   :  { %v2224_v16 = vadd.f32 %v195_v15, %v67_v55  ;;  %v197_v17 = vpop.f32.mrb[11].mxu0 }
  0xf5   :  { %v1861_v19 = vpop.eup %1860  ;;  %v2226_v20 = vadd.f32 %v197_v17, %v71_v50 }
  0xf6   :  { %298 = vrot.lane.b32.xlu0 %v1861_v19, %s1994_s0 }
  0xf7   :  { %v201_v21 = vpop.f32.mrb[12].mxu0 }
  0xf8   :  { %v2229_v22 = vadd.f32 %v201_v21, %v67_v55  ;;  %v203_v23 = vpop.f32.mrb[13].mxu0 }
  0xf9   :  { %v2231_v24 = vadd.f32 %v203_v23, %v71_v50 }
  0xfb   :  { %v207_v26 = vpop.f32.mrb[14].mxu0 }
  0xfc   :  { %v2233_v27 = vadd.f32 %v207_v26, %v67_v55  ;;  %v209_v28 = vpop.f32.mrb[15].mxu0 }
  0xfd   :  { %v210_v30 = vadd.f32 %v209_v28, %v71_v50 }
  0xff   :  { %v288_v31 = vadd.f32 %v284_v4, %v210_v30 }
 0x101   :  { %1862 = vtanh.f32 %v288_v31  ;;  %v1622_v41 = vmul.f32 -1.442695, %v288_v31 }
 0x102   :  { %1864 = vpow2.f32 %v1621_v37 }
 0x10b   :  { %v1863_v35 = vpop.eup %1862 }
 0x10c   :  { %322 = vrot.lane.b32.xlu0 %v1863_v35, %s1994_s0  ;;  %v1865_v39 = vpop.eup %1864 }
 0x10d   :  { %v292_v40 = vadd.f32 1.0, %v1865_v39 }
 0x10f   :  { %1866 = vrcp.f32 %v292_v40 }
 0x110   :  { %341 = vperm.xlu0 %1858, %v339_v36   ;;  %1868 = vpow2.f32 %v1622_v41 }
 0x119   :  { %v1867_v42 = vpop.eup %1866 }
 0x11a   :  { %v1869_v46 = vpop.eup %1868  ;;  %v296_v52 = vmul.f32 0.0, %v1867_v42 }
 0x11b   :  { %v316_v47 = vadd.f32 1.0, %v1869_v46 }
 0x11d   :  { %1870 = vrcp.f32 %v316_v47 }
 0x127   :  { %v1871_v48 = vpop.eup %1870 }
 0x128   :  { %v320_v58 = vmul.f32 0.0, %v1871_v48 }
 0x168   :  { %v299_v43 = vpop.permute.xlu0 %298 }
 0x169   :  { %v301_v44 = vmul.f32 %v1867_v42, %v299_v43 }
 0x16b   :  { %303 = vrot.lane.b32.xlu1 %v301_v44, %s1995_s1 }
 0x17e   :  { %v323_v49 = vpop.permute.xlu0 %322 }
 0x17f   :  { %v325_v50 = vmul.f32 %v1871_v48, %v323_v49  ;;  %v495_v49 = vsel %vm487_vm7, 1, %v1993_v45 }
 0x181   :  { %327 = vrot.lane.b32.xlu1 %v325_v50, %s1995_s1 }
 0x185   :  { %348 = vperm.xlu1 %1859, %v346_v51  }
 0x18f   :  { %v2257_v1 = vpop.permute.xlu0 %341 }
 0x190   :  { %vm343_vm3 = vcmp.eq.s32.totalorder %v2257_v1, 1  ;;  %v1351_v1 = vld [vmem:[%s2644_s6 + $0x18] sm:$0xff] }
 0x1dd   :  { %v304_v53 = vpop.permute.xlu1 %303 }
 0x1de   :  { %v2247_v55 = vadd.f32 %v304_v53, %v296_v52 }
 0x1e0   :  { %1872 = vtanh.f32 %v2247_v55  ;;  %v2297_v50 = vsel %vm343_vm3, %v2247_v55, 0.0 }
 0x1ea   :  { %v1873_v56 = vpop.eup %1872 }
 0x1eb   :  { %309 = vrot.lane.b32.xlu1 %v1873_v56, %s1994_s0 }
 0x1f3   :  { %v328_v60 = vpop.permute.xlu1 %327 }
 0x1f4   :  { %v2251_v61 = vadd.f32 %v328_v60, %v320_v58 }
 0x1f6   :  { %1874 = vtanh.f32 %v2251_v61 }
 0x200   :  { %v1875_v63 = vpop.eup %1874 }
 0x201   :  { %333 = vrot.lane.b32.xlu0 %v1875_v63, %s1994_s0 }
 0x204   :  { %v2255_v0 = vpop.permute.xlu1 %348 }
 0x205   :  { %vm350_vm4 = vcmp.eq.s32.totalorder %v2255_v0, 1  ;;  %v1350_v0 = vld [vmem:[%s2644_s6 + $0x10] sm:$0xff] }
 0x206   :  { %v2302_v51 = vsel %vm350_vm4, %v2251_v61, 0.0 }
 0x25d   :  { %v310_v4 = vpop.permute.xlu1 %309 }
 0x25e   :  { %v312_v5 = vmul.f32 %v1867_v42, %v310_v4 }
 0x260   :  { %v2262_v7 = vsel %vm343_vm3, %v312_v5, 0.0 }
 0x261   :  { %354 = vrot.lane.b32.xlu1 %v2262_v7, %s1995_s1 }
 0x273   :  { %v334_v10 = vpop.permute.xlu0 %333 }
 0x274   :  { %v336_v12 = vmul.f32 %v1871_v48, %v334_v10  ;;  %v488_v48 = vsel %vm486_vm6, 1, %v1993_v45 }
 0x276   :  { %v2269_v15 = vsel %vm350_vm4, %v336_v12, 0.0 }
 0x277   :  { %358 = vrot.lane.b32.xlu0 %v2269_v15, %s1994_s0 }
 0x2d3   :  { %v355_v17 = vpop.permute.xlu1 %354 }
 0x2e9   :  { %v359_v19 = vpop.permute.xlu0 %358 }
 0x2ea   :  { %v361_v21 = vsel %vm74_vm0, %v355_v17, %v359_v19 }
 0x2eb   :  { %1623 = vmatmul.mubr.msk.f32.vlgmr.msra.gmra.mrb[2].mxu1 %vm212_vm5, %v361_v21 }
 0x2ec   :  { %1757 = vmatpush1.bf16.msra.mxu1 %v2074_v13  ;;  %727 = vmatprep.mubr.f32.mxu1 %v1992_v3 }
 0x2ed   :  { %1759 = vmatprep.subr.bf16.mxu1 %v2086_v18 }
 0x2f0   :  { %1761 = vmatpush1.bf16.msra.mxu1 %v2105_v25 }
 0x2f1   :  { %1763 = vmatprep.subr.bf16.mxu1 %v2116_v29 }
 0x2f4   :  { %1765 = vmatpush1.bf16.msra.mxu1 %v2128_v33 }
 0x2f5   :  { %1767 = vmatprep.subr.bf16.mxu1 %v2132_v34 }
 0x2f8   :  { %1769 = vmatpush1.bf16.msra.mxu1 %v2147_v38 }
 0x2f9   :  { %1787 = vmatprep.subr.bf16.mxu1 %v2063_v8 }
 0x3be   :  { %v431_v23 = vpop.f32.mrb[2].mxu1 }
 0x3bf   :  { %v436_v26 = vadd.f32 %v431_v23, %v2208_v57  ;;  %v433_v28 = vpop.f32.mrb[3].mxu1 }
 0x3c0   :  { %v437_v30 = vadd.f32 %v433_v28, %v2231_v24 }
 0x3c1   :  { %1876 = vtanh.f32 %v436_v26  ;;  %v1624_v36 = vmul.f32 -1.442695, %v436_v26 }
 0x3c2   :  { %1878 = vtanh.f32 %v437_v30  ;;  %v1625_v37 = vmul.f32 -1.442695, %v437_v30 }
 0x3c3   :  { %1880 = vpow2.f32 %v1624_v36 }
 0x3c4   :  { %1882 = vpow2.f32 %v1625_v37 }
 0x3cb   :  { %v1877_v31 = vpop.eup %1876 }
 0x3cc   :  { %v1879_v35 = vpop.eup %1878  ;;  %447 = vrot.lane.b32.xlu1 %v1877_v31, %s1994_s0 }
 0x3cd   :  { %471 = vrot.lane.b32.xlu0 %v1879_v35, %s1994_s0  ;;  %v1881_v39 = vpop.eup %1880 }
 0x3ce   :  { %v1883_v40 = vpop.eup %1882  ;;  %v441_v41 = vadd.f32 1.0, %v1881_v39 }
 0x3cf   :  { %v465_v42 = vadd.f32 1.0, %v1883_v40 }
 0x3d0   :  { %1884 = vrcp.f32 %v441_v41 }
 0x3d1   :  { %1886 = vrcp.f32 %v465_v42 }
 0x3da   :  { %v1885_v57 = vpop.eup %1884 }
 0x3db   :  { %v1887_v43 = vpop.eup %1886  ;;  %v445_v52 = vmul.f32 %v1885_v57, %v2297_v50 }
 0x3dc   :  { %v469_v56 = vmul.f32 %v1887_v43, %v2302_v51 }
 0x43e   :  { %v448_v24 = vpop.permute.xlu1 %447 }
 0x43f   :  { %v450_v44 = vmul.f32 %v1885_v57, %v448_v24  ;;  %v472_v46 = vpop.permute.xlu0 %471 }
 0x440   :  { %v474_v47 = vmul.f32 %v1887_v43, %v472_v46 }
 0x441   :  { %452 = vrot.lane.b32.xlu1 %v450_v44, %s1995_s1 }
 0x442   :  { %476 = vrot.lane.b32.xlu0 %v474_v47, %s1995_s1 }
 0x445   :  { %490 = vperm.xlu1 %1859, %v488_v48   ;;  %v637_v48 = vsel %vm635_vm10, 1, %v1993_v45 }
 0x446   :  { %497 = vperm.xlu0 %1858, %v495_v49   ;;  %v644_v49 = vsel %vm636_vm11, 1, %v1993_v45 }
 0x4b3   :  { %v453_v53 = vpop.permute.xlu1 %452 }
 0x4b4   :  { %v2306_v58 = vadd.f32 %v453_v53, %v445_v52  ;;  %v477_v60 = vpop.permute.xlu0 %476 }
 0x4b5   :  { %v2308_v63 = vadd.f32 %v477_v60, %v469_v56 }
 0x4b6   :  { %1888 = vtanh.f32 %v2306_v58 }
 0x4b7   :  { %1890 = vtanh.f32 %v2308_v63 }
 0x4c0   :  { %v1889_v55 = vpop.eup %1888 }
 0x4c1   :  { %v1891_v4 = vpop.eup %1890  ;;  %458 = vrot.lane.b32.xlu1 %v1889_v55, %s1994_s0 }
 0x4c2   :  { %482 = vrot.lane.b32.xlu0 %v1891_v4, %s1994_s0 }
 0x4c4   :  { %v2314_v61 = vpop.permute.xlu1 %490 }
 0x4c5   :  { %v2316_v5 = vpop.permute.xlu0 %497  ;;  %vm492_vm8 = vcmp.eq.s32.totalorder %v2314_v61, 1  ;;  %v1354_v61 = vld [vmem:[%s2644_s6 + $0x30] sm:$0xff] }
 0x4c6   :  { %vm499_vm9 = vcmp.eq.s32.totalorder %v2316_v5, 1  ;;  %v2359_v52 = vsel %vm492_vm8, %v2306_v58, %v2297_v50  ;;  %v1353_v5 = vld [vmem:[%s2644_s6 + $0x28] sm:$0xff] }
 0x4c7   :  { %v2366_v56 = vsel %vm499_vm9, %v2308_v63, %v2302_v51 }
 0x533   :  { %v459_v10 = vpop.permute.xlu1 %458 }
 0x534   :  { %v461_v12 = vmul.f32 %v1885_v57, %v459_v10  ;;  %v483_v17 = vpop.permute.xlu0 %482 }
 0x535   :  { %v485_v19 = vmul.f32 %v1887_v43, %v483_v17 }
 0x536   :  { %v2323_v21 = vsel %vm492_vm8, %v461_v12, %v2262_v7 }
 0x537   :  { %503 = vrot.lane.b32.xlu1 %v2323_v21, %s1995_s1  ;;  %v2330_v23 = vsel %vm499_vm9, %v485_v19, %v2269_v15 }
 0x538   :  { %507 = vrot.lane.b32.xlu0 %v2330_v23, %s1994_s0 }
 0x5a9   :  { %v504_v26 = vpop.permute.xlu1 %503 }
 0x5aa   :  { %v508_v28 = vpop.permute.xlu0 %507 }
 0x5ab   :  { %v510_v30 = vsel %vm74_vm0, %v504_v26, %v508_v28 }
 0x5ac   :  { %1626 = vmatmul.mubr.msk.f32.vlgmr.msra.gmra.mrb[16].mxu0 %vm212_vm5, %v510_v30 }
 0x5ad   :  { %1773 = vmatpush1.bf16.msra.mxu0 %v2074_v13  ;;  %876 = vmatprep.mubr.f32.mxu0 %v1992_v3 }
 0x5ae   :  { %1775 = vmatprep.subr.bf16.mxu0 %v2086_v18 }
 0x5b1   :  { %1777 = vmatpush1.bf16.msra.mxu0 %v2105_v25 }
 0x5b2   :  { %1779 = vmatprep.subr.bf16.mxu0 %v2116_v29 }
 0x5b5   :  { %1781 = vmatpush1.bf16.msra.mxu0 %v2128_v33 }
 0x5b6   :  { %1783 = vmatprep.subr.bf16.mxu0 %v2132_v34 }
 0x5b9   :  { %1785 = vmatpush1.bf16.msra.mxu0 %v2147_v38 }
 0x5ba   :  { %1803 = vmatprep.subr.bf16.mxu0 %v2063_v8 }
 0x67f   :  { %v580_v7 = vpop.f32.mrb[16].mxu0 }
 0x680   :  { %v585_v15 = vadd.f32 %v580_v7, %v2212_v62  ;;  %v582_v31 = vpop.f32.mrb[17].mxu0 }
 0x681   :  { %v586_v35 = vadd.f32 %v582_v31, %v2226_v20 }
 0x682   :  { %1892 = vtanh.f32 %v585_v15  ;;  %v1627_v39 = vmul.f32 -1.442695, %v585_v15 }
 0x683   :  { %1894 = vtanh.f32 %v586_v35  ;;  %v1628_v40 = vmul.f32 -1.442695, %v586_v35 }
 0x684   :  { %1896 = vpow2.f32 %v1627_v39 }
 0x685   :  { %1898 = vpow2.f32 %v1628_v40 }
 0x68c   :  { %v1893_v36 = vpop.eup %1892 }
 0x68d   :  { %v1895_v37 = vpop.eup %1894  ;;  %596 = vrot.lane.b32.xlu1 %v1893_v36, %s1994_s0 }
 0x68e   :  { %620 = vrot.lane.b32.xlu0 %v1895_v37, %s1994_s0  ;;  %v1897_v41 = vpop.eup %1896 }
 0x68f   :  { %v1899_v42 = vpop.eup %1898  ;;  %v590_v57 = vadd.f32 1.0, %v1897_v41 }
 0x690   :  { %v614_v24 = vadd.f32 1.0, %v1899_v42 }
 0x691   :  { %1900 = vrcp.f32 %v590_v57 }
 0x692   :  { %1902 = vrcp.f32 %v614_v24 }
 0x69b   :  { %v1901_v62 = vpop.eup %1900 }
 0x69c   :  { %v1903_v43 = vpop.eup %1902  ;;  %v594_v53 = vmul.f32 %v1901_v62, %v2359_v52 }
 0x69d   :  { %v618_v55 = vmul.f32 %v1903_v43, %v2366_v56 }
 0x6ff   :  { %v597_v20 = vpop.permute.xlu1 %596 }
 0x700   :  { %v599_v44 = vmul.f32 %v1901_v62, %v597_v20  ;;  %v621_v46 = vpop.permute.xlu0 %620 }
 0x701   :  { %v623_v47 = vmul.f32 %v1903_v43, %v621_v46 }
 0x702   :  { %601 = vrot.lane.b32.xlu1 %v599_v44, %s1995_s1 }
 0x703   :  { %625 = vrot.lane.b32.xlu0 %v623_v47, %s1995_s1  ;;  %v786_v47 = vsel %vm784_vm14, 1, %v1993_v45 }
 0x706   :  { %639 = vperm.xlu1 %1859, %v637_v48   ;;  %v793_v48 = vsel %vm785_vm15, 1, %v1993_v45 }
 0x707   :  { %646 = vperm.xlu0 %1858, %v644_v49  }
 0x774   :  { %v602_v60 = vpop.permute.xlu1 %601 }
 0x775   :  { %v2369_v4 = vadd.f32 %v602_v60, %v594_v53  ;;  %v626_v10 = vpop.permute.xlu0 %625 }
 0x776   :  { %v2371_v12 = vadd.f32 %v626_v10, %v618_v55 }
 0x777   :  { %1904 = vtanh.f32 %v2369_v4 }
 0x778   :  { %1906 = vtanh.f32 %v2371_v12 }
 0x781   :  { %v1905_v50 = vpop.eup %1904 }
 0x782   :  { %v1907_v58 = vpop.eup %1906  ;;  %607 = vrot.lane.b32.xlu1 %v1905_v50, %s1994_s0 }
 0x783   :  { %631 = vrot.lane.b32.xlu0 %v1907_v58, %s1994_s0 }
 0x785   :  { %v2377_v51 = vpop.permute.xlu1 %639 }
 0x786   :  { %v2379_v63 = vpop.permute.xlu0 %646  ;;  %vm641_vm12 = vcmp.eq.s32.totalorder %v2377_v51, 1 }
 0x787   :  { %vm648_vm13 = vcmp.eq.s32.totalorder %v2379_v63, 1  ;;  %v2422_v49 = vsel %vm641_vm12, %v2369_v4, %v2359_v52 }
 0x788   :  { %v2429_v32 = vsel %vm648_vm13, %v2371_v12, %v2366_v56 }
 0x7f4   :  { %v608_v17 = vpop.permute.xlu1 %607 }
 0x7f5   :  { %v610_v19 = vmul.f32 %v1901_v62, %v608_v17  ;;  %v632_v26 = vpop.permute.xlu0 %631 }
 0x7f6   :  { %v634_v28 = vmul.f32 %v1903_v43, %v632_v26 }
 0x7f7   :  { %v2386_v30 = vsel %vm641_vm12, %v610_v19, %v2323_v21 }
 0x7f8   :  { %652 = vrot.lane.b32.xlu1 %v2386_v30, %s1995_s1  ;;  %v2393_v7 = vsel %vm648_vm13, %v634_v28, %v2330_v23 }
 0x7f9   :  { %656 = vrot.lane.b32.xlu0 %v2393_v7, %s1994_s0 }
 0x86a   :  { %v653_v15 = vpop.permute.xlu1 %652 }
 0x86b   :  { %v657_v31 = vpop.permute.xlu0 %656 }
 0x86c   :  { %v659_v35 = vsel %vm74_vm0, %v653_v15, %v657_v31 }
 0x86d   :  { %1629 = vmatmul.mubr.msk.f32.vlgmr.msra.gmra.mrb[4].mxu1 %vm212_vm5, %v659_v35 }
 0x86e   :  { %1789 = vmatpush1.bf16.msra.mxu1 %v2074_v13  ;;  %1013 = vmatprep.mubr.f32.mxu1 %v1992_v3 }
 0x86f   :  { %1791 = vmatprep.subr.bf16.mxu1 %v2086_v18 }
 0x872   :  { %1793 = vmatpush1.bf16.msra.mxu1 %v2105_v25 }
 0x873   :  { %1795 = vmatprep.subr.bf16.mxu1 %v2116_v29 }
 0x876   :  { %1797 = vmatpush1.bf16.msra.mxu1 %v2128_v33 }
 0x877   :  { %1799 = vmatprep.subr.bf16.mxu1 %v2132_v34 }
 0x87a   :  { %1801 = vmatpush1.bf16.msra.mxu1 %v2147_v38 }
 0x87b   :  { %1819 = vmatprep.subr.bf16.mxu1 %v2063_v8 }
 0x940   :  { %v729_v21 = vpop.f32.mrb[4].mxu1 }
 0x941   :  { %v734_v23 = vadd.f32 %v729_v21, %v2216_v6  ;;  %v731_v36 = vpop.f32.mrb[5].mxu1 }
 0x942   :  { %v735_v37 = vadd.f32 %v731_v36, %v2222_v14 }
 0x943   :  { %1908 = vtanh.f32 %v734_v23  ;;  %v1630_v41 = vmul.f32 -1.442695, %v734_v23 }
 0x944   :  { %1910 = vtanh.f32 %v735_v37  ;;  %v1631_v42 = vmul.f32 -1.442695, %v735_v37 }
 0x945   :  { %1912 = vpow2.f32 %v1630_v41 }
 0x946   :  { %1914 = vpow2.f32 %v1631_v42 }
 0x94d   :  { %v1909_v39 = vpop.eup %1908 }
 0x94e   :  { %v1911_v40 = vpop.eup %1910  ;;  %745 = vrot.lane.b32.xlu1 %v1909_v39, %s1994_s0 }
 0x94f   :  { %769 = vrot.lane.b32.xlu0 %v1911_v40, %s1994_s0  ;;  %v1913_v57 = vpop.eup %1912 }
 0x950   :  { %v1915_v8 = vpop.eup %1914  ;;  %v739_v24 = vadd.f32 1.0, %v1913_v57 }
 0x951   :  { %v763_v62 = vadd.f32 1.0, %v1915_v8 }
 0x952   :  { %1916 = vrcp.f32 %v739_v24 }
 0x953   :  { %1918 = vrcp.f32 %v763_v62 }
 0x95c   :  { %v1917_v6 = vpop.eup %1916 }
 0x95d   :  { %v1919_v20 = vpop.eup %1918  ;;  %v743_v53 = vmul.f32 %v1917_v6, %v2422_v49 }
 0x95e   :  { %v767_v55 = vmul.f32 %v1919_v20, %v2429_v32 }
 0x9c0   :  { %v746_v14 = vpop.permute.xlu1 %745 }
 0x9c1   :  { %v748_v43 = vmul.f32 %v1917_v6, %v746_v14  ;;  %v770_v44 = vpop.permute.xlu0 %769 }
 0x9c2   :  { %v772_v46 = vmul.f32 %v1919_v20, %v770_v44 }
 0x9c3   :  { %750 = vrot.lane.b32.xlu1 %v748_v43, %s1995_s1 }
 0x9c4   :  { %774 = vrot.lane.b32.xlu0 %v772_v46, %s1995_s1 }
 0x9c7   :  { %788 = vperm.xlu1 %1859, %v786_v47  }
 0x9c8   :  { %795 = vperm.xlu0 %1858, %v793_v48  }
 0xa35   :  { %v751_v60 = vpop.permute.xlu1 %750 }
 0xa36   :  { %v753_v45 = vadd.f32 %v751_v60, %v743_v53  ;;  %v775_v10 = vpop.permute.xlu0 %774 }
 0xa37   :  { %v777_v50 = vadd.f32 %v775_v10, %v767_v55 }
 0xa38   :  { %1920 = vtanh.f32 %v753_v45 }
 0xa39   :  { %1922 = vtanh.f32 %v777_v50 }
 0xa42   :  { %v1921_v58 = vpop.eup %1920 }
 0xa43   :  { %v1923_v17 = vpop.eup %1922  ;;  %756 = vrot.lane.b32.xlu1 %v1921_v58, %s1994_s0 }
 0xa44   :  { %780 = vrot.lane.b32.xlu0 %v1923_v17, %s1994_s0 }
 0xa46   :  { %v2434_v52 = vpop.permute.xlu1 %788 }
 0xa47   :  { %v2436_v4 = vpop.permute.xlu0 %795  ;;  %vm790_vm1 = vcmp.eq.s32.totalorder %v2434_v52, 1 }
 0xa48   :  { %vm797_vm2 = vcmp.eq.s32.totalorder %v2436_v4, 1  ;;  %v2473_v43 = vsel %vm790_vm1, %v753_v45, %v2422_v49 }
 0xa49   :  { %v2479_v46 = vsel %vm797_vm2, %v777_v50, %v2429_v32 }
 0xab5   :  { %v757_v56 = vpop.permute.xlu1 %756 }
 0xab6   :  { %v759_v12 = vmul.f32 %v1917_v6, %v757_v56  ;;  %v781_v19 = vpop.permute.xlu0 %780 }
 0xab7   :  { %v783_v26 = vmul.f32 %v1919_v20, %v781_v19 }
 0xab8   :  { %v2443_v28 = vsel %vm790_vm1, %v759_v12, %v2386_v30 }
 0xab9   :  { %801 = vrot.lane.b32.xlu1 %v2443_v28, %s1995_s1  ;;  %v2450_v15 = vsel %vm797_vm2, %v783_v26, %v2393_v7 }
 0xaba   :  { %805 = vrot.lane.b32.xlu0 %v2450_v15, %s1994_s0 }
 0xb2b   :  { %v802_v31 = vpop.permute.xlu1 %801 }
 0xb2c   :  { %v806_v35 = vpop.permute.xlu0 %805 }
 0xb2d   :  { %v808_v21 = vsel %vm74_vm0, %v802_v31, %v806_v35 }
 0xb2e   :  { %1632 = vmatmul.mubr.msk.f32.vlgmr.msra.gmra.mrb[18].mxu0 %vm212_vm5, %v808_v21 }
 0xb2f   :  { %1805 = vmatpush1.bf16.msra.mxu0 %v2074_v13  ;;  %1150 = vmatprep.mubr.f32.mxu0 %v1992_v3 }
 0xb30   :  { %1807 = vmatprep.subr.bf16.mxu0 %v2086_v18 }
 0xb33   :  { %1809 = vmatpush1.bf16.msra.mxu0 %v2105_v25 }
 0xb34   :  { %1811 = vmatprep.subr.bf16.mxu0 %v2116_v29 }
 0xb37   :  { %1813 = vmatpush1.bf16.msra.mxu0 %v2128_v33 }
 0xb38   :  { %1815 = vmatprep.subr.bf16.mxu0 %v2132_v34 }
 0xb3b   :  { %1817 = vmatpush1.bf16.msra.mxu0 %v2147_v38 }
 0xc01   :  { %v878_v30 = vpop.f32.mrb[18].mxu0 }
 0xc02   :  { %v883_v7 = vadd.f32 %v878_v30, %v2220_v11  ;;  %v880_v23 = vpop.f32.mrb[19].mxu0 }
 0xc03   :  { %v884_v36 = vadd.f32 %v880_v23, %v2218_v9 }
 0xc04   :  { %1924 = vtanh.f32 %v883_v7  ;;  %v1633_v40 = vmul.f32 -1.442695, %v883_v7 }
 0xc05   :  { %1926 = vtanh.f32 %v884_v36  ;;  %v1634_v41 = vmul.f32 -1.442695, %v884_v36 }
 0xc06   :  { %1928 = vpow2.f32 %v1633_v40 }
 0xc07   :  { %1930 = vpow2.f32 %v1634_v41 }
 0xc0e   :  { %v1925_v37 = vpop.eup %1924 }
 0xc0f   :  { %v1927_v39 = vpop.eup %1926  ;;  %894 = vrot.lane.b32.xlu1 %v1925_v37, %s1994_s0 }
 0xc10   :  { %918 = vrot.lane.b32.xlu0 %v1927_v39, %s1994_s0  ;;  %v1929_v42 = vpop.eup %1928 }
 0xc11   :  { %v1931_v57 = vpop.eup %1930  ;;  %v888_v8 = vadd.f32 1.0, %v1929_v42 }
 0xc12   :  { %v912_v24 = vadd.f32 1.0, %v1931_v57 }
 0xc13   :  { %1932 = vrcp.f32 %v888_v8 }
 0xc14   :  { %1934 = vrcp.f32 %v912_v24 }
 0xc1d   :  { %v1933_v11 = vpop.eup %1932 }
 0xc1e   :  { %v1935_v62 = vpop.eup %1934  ;;  %v892_v44 = vmul.f32 %v1933_v11, %v2473_v43 }
 0xc1f   :  { %v916_v48 = vmul.f32 %v1935_v62, %v2479_v46 }
 0xc81   :  { %v895_v9 = vpop.permute.xlu1 %894 }
 0xc82   :  { %v897_v6 = vmul.f32 %v1933_v11, %v895_v9  ;;  %v919_v14 = vpop.permute.xlu0 %918 }
 0xc83   :  { %v921_v20 = vmul.f32 %v1935_v62, %v919_v14 }
 0xc84   :  { %899 = vrot.lane.b32.xlu1 %v897_v6, %s1995_s1 }
 0xc85   :  { %923 = vrot.lane.b32.xlu0 %v921_v20, %s1995_s1 }
 0xcf6   :  { %v900_v47 = vpop.permute.xlu1 %899 }
 0xcf7   :  { %v902_v53 = vadd.f32 %v900_v47, %v892_v44  ;;  %v924_v60 = vpop.permute.xlu0 %923 }
 0xcf8   :  { %v926_v55 = vadd.f32 %v924_v60, %v916_v48 }
 0xcf9   :  { %1936 = vtanh.f32 %v902_v53  ;;  %v934_v37 = vsel %vm797_vm2, %v902_v53, %v2473_v43 }
 0xcfa   :  { %1938 = vtanh.f32 %v926_v55  ;;  %v936_v40 = vsel %vm790_vm1, %v926_v55, %v2479_v46 }
 0xd03   :  { %v1937_v10 = vpop.eup %1936 }
 0xd04   :  { %v1939_v58 = vpop.eup %1938  ;;  %905 = vrot.lane.b32.xlu1 %v1937_v10, %s1994_s0 }
 0xd05   :  { %929 = vrot.lane.b32.xlu0 %v1939_v58, %s1994_s0 }
 0xd76   :  { %v906_v49 = vpop.permute.xlu1 %905 }
 0xd77   :  { %v908_v45 = vmul.f32 %v1933_v11, %v906_v49  ;;  %v930_v17 = vpop.permute.xlu0 %929 }
 0xd78   :  { %v932_v56 = vmul.f32 %v1935_v62, %v930_v17 }
 0xd79   :  { %v2487_v32 = vsel %vm797_vm2, %v908_v45, %v2443_v28 }
 0xd7a   :  { %938 = vrot.lane.b32.xlu1 %v2487_v32, %s1995_s1  ;;  %v2494_v50 = vsel %vm790_vm1, %v932_v56, %v2450_v15 }
 0xd7b   :  { %942 = vrot.lane.b32.xlu0 %v2494_v50, %s1994_s0 }
 0xdec   :  { %v939_v12 = vpop.permute.xlu1 %938 }
 0xded   :  { %v943_v19 = vpop.permute.xlu0 %942 }
 0xdee   :  { %v945_v26 = vsel %vm74_vm0, %v939_v12, %v943_v19 }
 0xdef   :  { %1635 = vmatmul.mubr.msk.f32.vlgmr.msra.gmra.mrb[6].mxu1 %vm212_vm5, %v945_v26 }
 0xdf0   :  { %1821 = vmatpush1.bf16.msra.mxu1 %v2074_v13  ;;  %1287 = vmatprep.mubr.f32.mxu1 %v1992_v3 }
 0xdf1   :  { %1823 = vmatprep.subr.bf16.mxu1 %v2086_v18 }
 0xdf4   :  { %1825 = vmatpush1.bf16.msra.mxu1 %v2105_v25 }
 0xdf5   :  { %1827 = vmatprep.subr.bf16.mxu1 %v2116_v29 }
 0xdf8   :  { %1829 = vmatpush1.bf16.msra.mxu1 %v2128_v33 }
 0xdf9   :  { %1831 = vmatprep.subr.bf16.mxu1 %v2132_v34 }
 0xdfc   :  { %1833 = vmatpush1.bf16.msra.mxu1 %v2147_v38 }
 0xec2   :  { %v1015_v28 = vpop.f32.mrb[6].mxu1 }
 0xec3   :  { %v1020_v15 = vadd.f32 %v1015_v28, %v2224_v16  ;;  %v1017_v31 = vpop.f32.mrb[7].mxu1 }
 0xec4   :  { %v1021_v13 = vadd.f32 %v1017_v31, %v2214_v2 }
 0xec5   :  { %1940 = vtanh.f32 %v1020_v15  ;;  %v1636_v25 = vmul.f32 -1.442695, %v1020_v15 }
 0xec6   :  { %1942 = vtanh.f32 %v1021_v13  ;;  %v1637_v29 = vmul.f32 -1.442695, %v1021_v13 }
 0xec7   :  { %1944 = vpow2.f32 %v1636_v25 }
 0xec8   :  { %1946 = vpow2.f32 %v1637_v29 }
 0xecf   :  { %v1941_v35 = vpop.eup %1940 }
 0xed0   :  { %v1943_v18 = vpop.eup %1942  ;;  %1031 = vrot.lane.b32.xlu1 %v1941_v35, %s1994_s0 }
 0xed1   :  { %1055 = vrot.lane.b32.xlu0 %v1943_v18, %s1994_s0  ;;  %v1945_v33 = vpop.eup %1944 }
 0xed2   :  { %v1947_v34 = vpop.eup %1946  ;;  %v1025_v38 = vadd.f32 1.0, %v1945_v33 }
 0xed3   :  { %v1049_v21 = vadd.f32 1.0, %v1947_v34 }
 0xed4   :  { %1948 = vrcp.f32 %v1025_v38 }
 0xed5   :  { %1950 = vrcp.f32 %v1049_v21 }
 0xede   :  { %v1949_v16 = vpop.eup %1948 }
 0xedf   :  { %v1951_v30 = vpop.eup %1950  ;;  %v1029_v39 = vmul.f32 %v1949_v16, %v934_v37 }
 0xee0   :  { %v1053_v42 = vmul.f32 %v1951_v30, %v936_v40 }
 0xf42   :  { %v1032_v2 = vpop.permute.xlu1 %1031 }
 0xf43   :  { %v1034_v7 = vmul.f32 %v1949_v16, %v1032_v2  ;;  %v1056_v23 = vpop.permute.xlu0 %1055 }
 0xf44   :  { %v1058_v36 = vmul.f32 %v1951_v30, %v1056_v23 }
 0xf45   :  { %1036 = vrot.lane.b32.xlu1 %v1034_v7, %s1995_s1 }
 0xf46   :  { %1060 = vrot.lane.b32.xlu0 %v1058_v36, %s1995_s1 }
 0xfb7   :  { %v1037_v41 = vpop.permute.xlu1 %1036 }
 0xfb8   :  { %v1039_v57 = vadd.f32 %v1037_v41, %v1029_v39  ;;  %v1061_v8 = vpop.permute.xlu0 %1060 }
 0xfb9   :  { %v1063_v24 = vadd.f32 %v1061_v8, %v1053_v42 }
 0xfba   :  { %1952 = vtanh.f32 %v1039_v57  ;;  %v1071_v28 = vsel %vm648_vm13, %v1039_v57, %v934_v37 }
 0xfbb   :  { %1954 = vtanh.f32 %v1063_v24  ;;  %v1073_v31 = vsel %vm641_vm12, %v1063_v24, %v936_v40 }
 0xfc4   :  { %v1953_v11 = vpop.eup %1952 }
 0xfc5   :  { %v1955_v9 = vpop.eup %1954  ;;  %1042 = vrot.lane.b32.xlu1 %v1953_v11, %s1994_s0 }
 0xfc6   :  { %1066 = vrot.lane.b32.xlu0 %v1955_v9, %s1994_s0 }
0x1037   :  { %v1043_v4 = vpop.permute.xlu1 %1042 }
0x1038   :  { %v1045_v62 = vmul.f32 %v1949_v16, %v1043_v4  ;;  %v1067_v6 = vpop.permute.xlu0 %1066 }
0x1039   :  { %v1069_v14 = vmul.f32 %v1951_v30, %v1067_v6 }
0x103a   :  { %v1070_v52 = vsel %vm648_vm13, %v1045_v62, %v2487_v32 }
0x103b   :  { %1075 = vrot.lane.b32.xlu1 %v1070_v52, %s1995_s1  ;;  %v1072_v20 = vsel %vm641_vm12, %v1069_v14, %v2494_v50 }
0x103c   :  { %1079 = vrot.lane.b32.xlu0 %v1072_v20, %s1994_s0 }
0x10ad   :  { %v1076_v43 = vpop.permute.xlu1 %1075 }
0x10ae   :  { %v1080_v44 = vpop.permute.xlu0 %1079 }
0x10af   :  { %v1082_v46 = vsel %vm74_vm0, %v1076_v43, %v1080_v44 }
0x10b0   :  { %1638 = vmatmul.mubr.msk.f32.vlgmr.msra.gmra.mrb[20].mxu0 %vm212_vm5, %v1082_v46 }
0x1183   :  { %v1152_v47 = vpop.f32.mrb[20].mxu0 }
0x1184   :  { %v1157_v48 = vadd.f32 %v1152_v47, %v2229_v22  ;;  %v1154_v53 = vpop.f32.mrb[21].mxu0 }
0x1185   :  { %v1158_v60 = vadd.f32 %v1154_v53, %v2210_v59 }
0x1186   :  { %1956 = vtanh.f32 %v1157_v48  ;;  %v1639_v58 = vmul.f32 -1.442695, %v1157_v48 }
0x1187   :  { %1958 = vtanh.f32 %v1158_v60  ;;  %v1640_v49 = vmul.f32 -1.442695, %v1158_v60 }
0x1188   :  { %1960 = vpow2.f32 %v1639_v58 }
0x1189   :  { %1962 = vpow2.f32 %v1640_v49  ;;  %v1355_v49 = vld [vmem:[%s2644_s6 + $0x38] sm:$0xff] }
0x1190   :  { %v1957_v55 = vpop.eup %1956 }
0x1191   :  { %v1959_v10 = vpop.eup %1958  ;;  %1168 = vrot.lane.b32.xlu1 %v1957_v55, %s1994_s0  ;;  %v1996_v55 = vmov 0.0|0.0  }
0x1192   :  { %1192 = vrot.lane.b32.xlu0 %v1959_v10, %s1994_s0  ;;  %v1961_v45 = vpop.eup %1960  ;;  %1834 = vmatprep.subr.bf16.mxu0 %v1996_v55  ;;  %v1352_v10 = vld [vmem:[%s2644_s6 + $0x20] sm:$0xff] }
0x1193   :  { %v1963_v17 = vpop.eup %1962  ;;  %v1162_v56 = vadd.f32 1.0, %v1961_v45  ;;  %1846 = vmatprep.subr.bf16.mxu1 %v1996_v55  ;;  %v1835_v58 = vpack.c.bf16 %v1353_v5, %v1352_v10  ;;  %v1838_v45 = vpack.c.bf16 %v1355_v49, %v1354_v61 }
0x1194   :  { %v1186_v32 = vadd.f32 1.0, %v1963_v17 }
0x1195   :  { %1964 = vrcp.f32 %v1162_v56  ;;  %1836 = vmatpush3.bf16.msra.mxu0 %v1835_v58 }
0x1196   :  { %1966 = vrcp.f32 %v1186_v32  ;;  %1837 = vmatprep.subr.bf16.mxu0 %v1996_v55  ;;  %v1346_v32 = vld [vmem:[%s2645_s2] sm:$0xff] }
0x1199   :  { %1839 = vmatpush3.bf16.msra.mxu0 %v1838_v45 }
0x119a   :  { %1840 = vmatprep.subr.bf16.mxu0 %v1996_v55 }
0x119f   :  { %v1965_v22 = vpop.eup %1964 }
0x11a0   :  { %v1967_v50 = vpop.eup %1966  ;;  %v1166_v15 = vmul.f32 %v1965_v22, %v1071_v28 }
0x11a1   :  { %v1190_v35 = vmul.f32 %v1967_v50, %v1073_v31 }
0x1203   :  { %v1169_v59 = vpop.permute.xlu1 %1168 }
0x1204   :  { %v1171_v12 = vmul.f32 %v1965_v22, %v1169_v59  ;;  %v1193_v19 = vpop.permute.xlu0 %1192  ;;  %v1357_v59 = vld [vmem:[%s2644_s6 + $0x48] sm:$0xff] }
0x1205   :  { %v1195_v26 = vmul.f32 %v1967_v50, %v1193_v19  ;;  %v1359_v19 = vld [vmem:[%s2644_s6 + $0x58] sm:$0xff] }
0x1206   :  { %1173 = vrot.lane.b32.xlu1 %v1171_v12, %s1995_s1  ;;  %v1358_v12 = vld [vmem:[%s2644_s6 + $0x50] sm:$0xff] }
0x1207   :  { %1197 = vrot.lane.b32.xlu0 %v1195_v26, %s1995_s1  ;;  %v1850_v26 = vpack.c.bf16 %v1359_v19, %v1358_v12 }
0x1278   :  { %v1174_v13 = vpop.permute.xlu1 %1173 }
0x1279   :  { %v1176_v18 = vadd.f32 %v1174_v13, %v1166_v15  ;;  %v1198_v25 = vpop.permute.xlu0 %1197 }
0x127a   :  { %v1200_v29 = vadd.f32 %v1198_v25, %v1190_v35 }
0x127b   :  { %1968 = vtanh.f32 %v1176_v18 }
0x127c   :  { %1970 = vtanh.f32 %v1200_v29  ;;  %v1210_v44 = vsel %vm492_vm8, %v1200_v29, %v1073_v31  ;;  %v1348_v29 = vld [vmem:[%s2644_s6] sm:$0xff] }
0x1285   :  { %v1969_v33 = vpop.eup %1968 }
0x1286   :  { %v1971_v34 = vpop.eup %1970  ;;  %1179 = vrot.lane.b32.xlu1 %v1969_v33, %s1994_s0  ;;  %v1349_v33 = vld [vmem:[%s2644_s6 + $0x8] sm:$0xff] }
0x1287   :  { %1203 = vrot.lane.b32.xlu0 %v1971_v34, %s1994_s0  ;;  %v1841_v34 = vpack.c.bf16 %v1349_v33, %v1348_v29 }
0x12f8   :  { %v1180_v38 = vpop.permute.xlu1 %1179 }
0x12f9   :  { %v1182_v63 = vmul.f32 %v1965_v22, %v1180_v38  ;;  %v1204_v21 = vpop.permute.xlu0 %1203  ;;  %v1356_v22 = vld [vmem:[%s2644_s6 + $0x40] sm:$0xff] }
0x12fa   :  { %v1206_v16 = vmul.f32 %v1967_v50, %v1204_v21  ;;  %v1847_v50 = vpack.c.bf16 %v1357_v59, %v1356_v22 }
0x12fb   :  { %v2546_v51 = vsel %vm499_vm9, %v1182_v63, %v1070_v52  ;;  %v1844_v63 = vpack.c.bf16 %v1351_v1, %v1350_v0 }
0x12fc   :  { %1212 = vrot.lane.b32.xlu1 %v2546_v51, %s1995_s1  ;;  %v2552_v2 = vsel %vm492_vm8, %v1206_v16, %v1072_v20  ;;  %v1208_v20 = vsel %vm499_vm9, %v1176_v18, %v1071_v28 }
0x12fd   :  { %1216 = vrot.lane.b32.xlu0 %v2552_v2, %s1994_s0 }
0x136e   :  { %v1213_v30 = vpop.permute.xlu1 %1212 }
0x136f   :  { %v1217_v7 = vpop.permute.xlu0 %1216 }
0x1370   :  { %v1219_v23 = vsel %vm74_vm0, %v1213_v30, %v1217_v7 }
0x1371   :  { %1641 = vmatmul.mubr.msk.f32.vlgmr.msra.gmra.mrb[8].mxu1 %vm212_vm5, %v1219_v23  ;;  %vm1997_vm5 = vmmov 0  }
0x1372   :  { %1673 = vmatprep.mubr.msk.f32.mxu0 %vm1997_vm5, %v1992_v3  ;;  %1695 = vmatprep.mubr.msk.f32.mxu1 %vm1997_vm5, %v1992_v3 }
0x1373   :  { %1848 = vmatpush3.bf16.msra.mxu1 %v1847_v50 }
0x1374   :  { %1849 = vmatprep.subr.bf16.mxu1 %v1996_v55 }
0x1377   :  { %1851 = vmatpush3.bf16.msra.mxu1 %v1850_v26 }
0x1444   :  { %v1289_v36 = vpop.f32.mrb[8].mxu1 }
0x1445   :  { %v1294_v37 = vadd.f32 %v1289_v36, %v2233_v27  ;;  %v1291_v39 = vpop.f32.mrb[9].mxu1 }
0x1446   :  { %v1295_v40 = vadd.f32 %v1291_v39, %v2206_v54 }
0x1447   :  { %1972 = vtanh.f32 %v1294_v37  ;;  %v1642_v57 = vmul.f32 -1.442695, %v1294_v37  ;;  %v1647_v37 = vld [vmem:[%s2646_s7] ss:$0 sm:$0xff] }
0x1448   :  { %1974 = vtanh.f32 %v1295_v40  ;;  %v1643_v8 = vmul.f32 -1.442695, %v1295_v40 }
0x1449   :  { %1976 = vpow2.f32 %v1642_v57 }
0x144a   :  { %1978 = vpow2.f32 %v1643_v8 }
0x1451   :  { %v1973_v41 = vpop.eup %1972 }
0x1452   :  { %v1975_v42 = vpop.eup %1974  ;;  %1305 = vrot.lane.b32.xlu0 %v1973_v41, %s1994_s0 }
0x1453   :  { %1329 = vrot.lane.b32.xlu1 %v1975_v42, %s1994_s0  ;;  %v1977_v24 = vpop.eup %1976 }
0x1454   :  { %v1979_v11 = vpop.eup %1978  ;;  %v1299_v9 = vadd.f32 1.0, %v1977_v24  ;;  %v1649_v24 = vld [vmem:[%s2646_s7 + $0x2] ss:$0 sm:$0xff] }
0x1455   :  { %v1323_v4 = vadd.f32 1.0, %v1979_v11 }
0x1456   :  { %1980 = vrcp.f32 %v1299_v9 }
0x1457   :  { %1982 = vrcp.f32 %v1323_v4 }
0x1460   :  { %v1981_v27 = vpop.eup %1980 }
0x1461   :  { %v1983_v62 = vpop.eup %1982  ;;  %v1303_v43 = vmul.f32 %v1981_v27, %v1208_v20 }
0x1462   :  { %v1327_v47 = vmul.f32 %v1983_v62, %v1210_v44 }
0x14c4   :  { %v1306_v54 = vpop.permute.xlu0 %1305 }
0x14c5   :  { %v1308_v6 = vmul.f32 %v1981_v27, %v1306_v54  ;;  %v1330_v14 = vpop.permute.xlu1 %1329 }
0x14c6   :  { %v1332_v52 = vmul.f32 %v1983_v62, %v1330_v14 }
0x14c7   :  { %1310 = vrot.lane.b32.xlu0 %v1308_v6, %s1995_s1 }
0x14c8   :  { %1334 = vrot.lane.b32.xlu1 %v1332_v52, %s1995_s1 }
0x1539   :  { %v1311_v46 = vpop.permute.xlu0 %1310 }
0x153a   :  { %v1313_v48 = vadd.f32 %v1311_v46, %v1303_v43  ;;  %v1335_v53 = vpop.permute.xlu1 %1334 }
0x153b   :  { %v1337_v60 = vadd.f32 %v1335_v53, %v1327_v47 }
0x153c   :  { %1984 = vtanh.f32 %v1313_v48 }
0x153d   :  { %1986 = vtanh.f32 %v1337_v60 }
0x153e   :  { %1988 = vtanh.f32 %v1346_v32 }
0x1546   :  { %v1985_v17 = vpop.eup %1984 }
0x1547   :  { %v1987_v56 = vpop.eup %1986  ;;  %1316 = vrot.lane.b32.xlu0 %v1985_v17, %s1994_s0 }
0x1548   :  { %1340 = vrot.lane.b32.xlu1 %v1987_v56, %s1994_s0  ;;  %v1989_v28 = vpop.eup %1988 }
0x1549   :  { %1696 = vmatmul.mubr.msk.f32.vlgmr.msra.gmra.mrb[10].mxu1 %vm74_vm0, %v1989_v28 }
0x15b9   :  { %v1317_v15 = vpop.permute.xlu0 %1316 }
0x15ba   :  { %v1319_v31 = vmul.f32 %v1981_v27, %v1317_v15  ;;  %v1341_v13 = vpop.permute.xlu1 %1340 }
0x15bb   :  { %v1343_v35 = vmul.f32 %v1983_v62, %v1341_v13 }
0x15bc   :  { %v1344_v18 = vsel %vm350_vm4, %v1319_v31, %v2546_v51 }
0x15bd   :  { %1436 = vrot.lane.b32.xlu0 %v1344_v18, %s1995_s1  ;;  %v1345_v25 = vsel %vm343_vm3, %v1343_v35, %v2552_v2  ;;  %vm1607_vm3 = vcmask 7168  }
0x15be   :  { %1361 = vrot.lane.b32.xlu1 %v1345_v25, %s1995_s1 }
0x161c   :  { %v1579_v16 = vpop.f32.mrb[10].mxu1 }
0x161d   :  { %v1697_v51 = vpop.f32.mrb[11].mxu1 }
0x162f   :  { %v1437_v21 = vpop.permute.xlu0 %1436 }
0x1630   :  { %v1362_v38 = vpop.permute.xlu1 %1361 }
0x1631   :  { %1674 = vmatmul.mubr.msk.f32.vlgmr.msra.gmra.mrb[22].mxu0 %vm74_vm0, %v1362_v38 }
0x1632   :  { %1842 = vmatpush3.bf16.msra.mxu0 %v1841_v34  ;;  %1684 = vmatprep.mubr.msk.f32.mxu0 %vm1997_vm5, %v1992_v3  ;;  %v1648_v3 = vld [vmem:[%s2646_s7 + $0x1] ss:$0 sm:$0xff] }
0x1633   :  { %1843 = vmatprep.subr.bf16.mxu0 %v1996_v55 }
0x1636   :  { %1845 = vmatpush3.bf16.msra.mxu0 %v1844_v63 }
0x1639   :  { %1685 = vmatmul.mubr.msk.f32.vlgmr.msra.gmra.mrb[24].mxu0 %vm74_vm0, %v1437_v21 }
0x1704   :  { %v1431_v2 = vpop.f32.mrb[22].mxu0 }
0x1705   :  { %v1675_v30 = vpop.f32.mrb[23].mxu0 }
0x170c   :  { %v1506_v7 = vpop.f32.mrb[24].mxu0 }
0x170d   :  { %v1507_v23 = vadd.f32 %v1506_v7, %v1431_v2  ;;  %v1686_v36 = vpop.f32.mrb[25].mxu0 }
0x170f   :  { %v1583_v39 = vadd.f32 %v1579_v16, %v1507_v23 }
0x1711   :  { %v1589_v40 = vadd.f32 %v1647_v37, %v1583_v39 }
0x1713   :  { %v1590_v41 = vmax.f32 %v1589_v40, 0.0 }
0x1715   :  { %1990 = vtanh.f32 %v1590_v41 }
0x171f   :  { %v1991_v42 = vpop.eup %1990 }
0x1720   :  { %v1597_v57 = vmul.f32 %v1991_v42, %v1648_v3 }
0x1722   :  { %v1598_v8 = vsel %vm74_vm0, %v1597_v57, 0.0 }
0x1723   :  { %1599 = vadd.xlane.f32.xlu1 %v1598_v8 }
0x17b0   :  { %v1600_v11 = vpop.xlane.xlu1 %1599 }
0x17b1   :  { %v1606_v9 = vadd.f32 %v1649_v24, %v1600_v11 }
0x17b3   :  { %1608 = vst.msk [vmem:[%s2647_s8] sm:$0xff] %vm1607_vm3, %v1606_v9 }

</bundles_post_ra>
